<compile_context>
chip_gen: v6e
topology: v6e:2x2x1
jax: 0.10.0
libtpu: 0.0.40
codegen_flags: <defaults>
</compile_context>

<pallas_src>
import functools

import jax
import jax.numpy as jnp
from jax import lax
from jax.experimental import pallas as pl
from jax.experimental.pallas import tpu as pltpu

_PREC = lax.Precision.HIGHEST


def _bilstm_linear_kernel(
    x_ref,      # (T*Bp, 2D)  time-major: [x(t) | x(T-1-t)] per row block
    wih_ref,    # (2D, 8H)    block input weight (fwd rows -> fwd cols, bwd rows -> bwd cols)
    whh_ref,    # (2H, 8H)    block-diagonal recurrent weight (rows: [h_f | h_b])
    b_ref,      # (1, 8H)     combined biases in fused gate layout
    w3_ref,     # (2H, Cp)    final linear weight (transposed, lane-padded)
    b3_ref,     # (1, Cp)     final linear bias (lane-padded)
    out_ref,    # (T*Bp, Cp)  output
    px_ref,     # (T*Bp, 8H)  scratch: hoisted, pre-interleaved input projections (+ bias)
    h_ref,      # (T*Bp, 2H)  scratch: [h_fwd | h_bwd] per timestep
    *, T, Bp, H,
):
    # ---- 1) hoisted, batched input projection for both directions ----------
    # Row block k already carries x(t=k) in the first D cols and x(t=T-1-k) in the
    # last D cols, so this single matmul produces the per-step gate pre-activations
    # for BOTH directions in their final interleaved lane layout (bias folded in).
    px_ref[...] = (
        jnp.dot(x_ref[...], wih_ref[...],
                preferred_element_type=jnp.float32, precision=_PREC)
        + b_ref[...]
    )

    whh = whh_ref[...]                           # hoisted out of the unrolled loop

    h0 = jnp.zeros((Bp, 2 * H), jnp.float32)     # [h_f | h_b]
    c0 = jnp.zeros((Bp, 2 * H), jnp.float32)     # [c_f | c_b]

    # ---- 2) interleaved fwd/bwd recurrence, one fused matmul per step ------
    # Gate layout (each H lanes): [i_f, i_b, f_f, f_b, o_f, o_b, g_f, g_b]
    def step(k, carry):
        h_cat, c_cat = carry
        row_f = pl.multiple_of(k * Bp, Bp)                # fwd processes t = k
        row_b = pl.multiple_of((T - 1 - k) * Bp, Bp)      # bwd processes t = T-1-k

        gates = (
            jnp.dot(h_cat, whh,
                    preferred_element_type=jnp.float32, precision=_PREC)
            + px_ref[pl.ds(row_f, Bp), :]                 # (Bp, 8H), lane-dense load
        )

        sig = jax.nn.sigmoid(gates[:, 0:6 * H])           # i|f|o for both dirs (96 lanes)
        g_cat = jnp.tanh(gates[:, 6 * H:8 * H])           # g for both dirs
        i_cat = sig[:, 0:2 * H]
        f_cat = sig[:, 2 * H:4 * H]
        o_cat = sig[:, 4 * H:6 * H]

        c_new = f_cat * c_cat + i_cat * g_cat
        h_new = o_cat * jnp.tanh(c_new)

        h_ref[pl.ds(row_f, Bp), 0:H] = h_new[:, 0:H]           # forward hidden @ t=k
        h_ref[pl.ds(row_b, Bp), H:2 * H] = h_new[:, H:2 * H]   # backward hidden @ t=T-1-k
        return (h_new, c_new)

    lax.fori_loop(0, T, step, (h0, c0), unroll=True)

    # ---- 3) batched output linear: one MXU op + one lane-dense store -------
    y = (
        jnp.dot(h_ref[...], w3_ref[...],
                preferred_element_type=jnp.float32, precision=_PREC)
        + b3_ref[...]
    )
    out_ref[...] = y.astype(out_ref.dtype)


def _prep_params(params, D, H, Cpad):
    """Pre-permute / fuse parameters into the kernel's lane layout (plain JAX glue)."""
    def split4(w):  # last axis is 4H in PyTorch gate order (i, f, g, o)
        return (w[..., 0 * H:1 * H], w[..., 1 * H:2 * H],
                w[..., 2 * H:3 * H], w[..., 3 * H:4 * H])

    wih_f = params["wih_f"].T.astype(jnp.float32)        # (D, 4H)
    wih_b = params["wih_b"].T.astype(jnp.float32)
    whh_f = params["whh_f"].T.astype(jnp.float32)        # (H, 4H)
    whh_b = params["whh_b"].T.astype(jnp.float32)
    b_f = (params["bih_f"] + params["bhh_f"]).astype(jnp.float32)   # (4H,)
    b_b = (params["bih_b"] + params["bhh_b"]).astype(jnp.float32)

    # Input weight: (2D, 8H). First D rows consume x(t) and feed the fwd gate
    # columns; last D rows consume x(T-1-t) and feed the bwd gate columns.
    i_f, f_f, g_f, o_f = split4(wih_f)
    i_b, f_b, g_b, o_b = split4(wih_b)
    Zd = jnp.zeros((D, H), jnp.float32)
    wih_top = jnp.concatenate([i_f, Zd, f_f, Zd, o_f, Zd, g_f, Zd], axis=-1)
    wih_bot = jnp.concatenate([Zd, i_b, Zd, f_b, Zd, o_b, Zd, g_b], axis=-1)
    wih_both = jnp.concatenate([wih_top, wih_bot], axis=0)          # (2D, 8H)

    hi_f, hf_f, hg_f, ho_f = split4(whh_f)
    hi_b, hf_b, hg_b, ho_b = split4(whh_b)
    Zh = jnp.zeros((H, H), jnp.float32)
    row_f = jnp.concatenate([hi_f, Zh, hf_f, Zh, ho_f, Zh, hg_f, Zh], axis=-1)
    row_b = jnp.concatenate([Zh, hi_b, Zh, hf_b, Zh, ho_b, Zh, hg_b], axis=-1)
    whh_blk = jnp.concatenate([row_f, row_b], axis=0)               # (2H, 8H)

    bi_f, bf_f, bg_f, bo_f = split4(b_f)
    bi_b, bf_b, bg_b, bo_b = split4(b_b)
    b_all = jnp.concatenate(
        [bi_f, bi_b, bf_f, bf_b, bo_f, bo_b, bg_f, bg_b]).reshape(1, 8 * H)

    C = params["b3"].shape[0]
    w3 = params["w3"].astype(jnp.float32)                           # (C, 2H)
    w3_pad = jnp.zeros((2 * H, Cpad), jnp.float32).at[:, :C].set(w3.T)
    b3_pad = jnp.zeros((1, Cpad), jnp.float32).at[:, :C].set(
        params["b3"].astype(jnp.float32))
    return wih_both, whh_blk, b_all, w3_pad, b3_pad


def rnn_net_forward(x, params):
    """x: (B, T, D) float32, batch_first like PyTorch. Returns (B, T, C)."""
    B, T, D = x.shape
    H = params["whh_f"].shape[1]
    C = params["b3"].shape[0]
    Bp = max(8, ((B + 7) // 8) * 8)        # pad batch to a full sublane group
    Cpad = 128                             # lane-dense output

    wih_both, whh_blk, b_all, w3_pad, b3_pad = _prep_params(params, D, H, Cpad)

    # Layout plumbing (wrapper side): time-major, batch-padded, with the
    # time-reversed copy concatenated along features so the kernel's hoisted
    # projection emits both directions pre-interleaved.
    x_tm = jnp.transpose(x, (1, 0, 2)).astype(jnp.float32)          # (T, B, D)
    x_tm = jnp.pad(x_tm, ((0, 0), (0, Bp - B), (0, 0)))             # (T, Bp, D)
    x_both = jnp.concatenate([x_tm, x_tm[::-1]], axis=-1)           # (T, Bp, 2D)
    x_flat = x_both.reshape(T * Bp, 2 * D)                          # (T*Bp, 2D)

    vmem = pl.BlockSpec(memory_space=pltpu.MemorySpace.VMEM)
    kernel = functools.partial(_bilstm_linear_kernel, T=T, Bp=Bp, H=H)
    out_flat = pl.pallas_call(
        kernel,
        out_shape=jax.ShapeDtypeStruct((T * Bp, Cpad), jnp.float32),
        in_specs=[vmem] * 6,
        out_specs=vmem,
        scratch_shapes=[
            pltpu.VMEM((T * Bp, 8 * H), jnp.float32),   # hoisted input projections
            pltpu.VMEM((T * Bp, 2 * H), jnp.float32),   # [h_fwd | h_bwd] per timestep
        ],
    )(x_flat, wih_both, whh_blk, b_all, w3_pad, b3_pad)

    out = out_flat.reshape(T, Bp, Cpad)[:, :B, :C]                  # (T, B, C)
    return jnp.transpose(out, (1, 0, 2))                            # (B, T, C)


# ---------------- pure-JAX reference (for correctness check) ----------------
def _ref_forward(x, params):
    B, T, D = x.shape
    H = params["whh_f"].shape[1]

    def run_dir(wih, whh, bih, bhh, reverse):
        b = bih + bhh

        def step(carry, x_t):
            h, c = carry
            gates = (jnp.dot(x_t, wih.T, precision=_PREC)
                     + jnp.dot(h, whh.T, precision=_PREC) + b)
            i = jax.nn.sigmoid(gates[:, 0 * H:1 * H])
            f = jax.nn.sigmoid(gates[:, 1 * H:2 * H])
            g = jnp.tanh(gates[:, 2 * H:3 * H])
            o = jax.nn.sigmoid(gates[:, 3 * H:4 * H])
            c = f * c + i * g
            h = o * jnp.tanh(c)
            return (h, c), h

        xs = jnp.transpose(x, (1, 0, 2))                            # (T, B, D)
        if reverse:
            xs = xs[::-1]
        (_, _), hs = lax.scan(step, (jnp.zeros((B, H)), jnp.zeros((B, H))), xs)
        if reverse:
            hs = hs[::-1]
        return jnp.transpose(hs, (1, 0, 2))                         # (B, T, H)

    h_f = run_dir(params["wih_f"], params["whh_f"], params["bih_f"], params["bhh_f"], False)
    h_b = run_dir(params["wih_b"], params["whh_b"], params["bih_b"], params["bhh_b"], True)
    out = jnp.concatenate([h_f, h_b], axis=-1)                      # (B, T, 2H)
    return jnp.dot(out, params["w3"].T, precision=_PREC) + params["b3"]


def init_params(key, D, H, C):
    k = 1.0 / jnp.sqrt(H)
    names_shapes = [
        ("wih_f", (4 * H, D)), ("whh_f", (4 * H, H)),
        ("bih_f", (4 * H,)), ("bhh_f", (4 * H,)),
        ("wih_b", (4 * H, D)), ("whh_b", (4 * H, H)),
        ("bih_b", (4 * H,)), ("bhh_b", (4 * H,)),
        ("w3", (C, 2 * D)), ("b3", (C,)),
    ]
    params = {}
    keys = jax.random.split(key, len(names_shapes))
    for (name, shape), kk in zip(names_shapes, keys):
        params[name] = jax.random.uniform(kk, shape, jnp.float32, -k, k)
    return params


if __name__ == "__main__":
    B, T, D, H, C = 2, 8, 16, 16, 4   # input_size == hidden_size (see note above)
    key = jax.random.PRNGKey(0)
    kx, kp = jax.random.split(key)
    x = jax.random.normal(kx, (B, T, D), jnp.float32)
    params = init_params(kp, D, H, C)

    y = jax.block_until_ready(rnn_net_forward(x, params))
    assert y.shape == (B, T, C), y.shape

    y_ref = jax.block_until_ready(_ref_forward(x, params))
    max_err = float(jnp.max(jnp.abs(y - y_ref)))
    assert jnp.allclose(y, y_ref, atol=1e-4, rtol=1e-4), max_err

    print("KERNEL_OK")
</pallas_src>

<mosaic_0001>
module attributes {stable_mosaic.version = 11 : i64} {
  func.func @_bilstm_linear_kernel(%arg0: memref<64x32xf32, #tpu.memory_space<vmem>>, %arg1: memref<32x128xf32, #tpu.memory_space<vmem>>, %arg2: memref<32x128xf32, #tpu.memory_space<vmem>>, %arg3: memref<1x128xf32, #tpu.memory_space<vmem>>, %arg4: memref<32x128xf32, #tpu.memory_space<vmem>>, %arg5: memref<1x128xf32, #tpu.memory_space<vmem>>, %arg6: memref<64x128xf32, #tpu.memory_space<vmem>>, %arg7: memref<64x128xf32, #tpu.memory_space<vmem>>, %arg8: memref<64x32xf32, #tpu.memory_space<vmem>>) attributes {dimension_semantics = [], scalar_prefetch = 0 : i64, scratch_operands = 2 : i64, tpu.core_type = #tpu.core_type<tc>} {
    %c0 = arith.constant 0 : index
    %c0_0 = arith.constant 0 : index
    %0 = vector.load %arg0[%c0, %c0_0] : memref<64x32xf32, #tpu.memory_space<vmem>>, vector<64x32xf32>
    %c0_1 = arith.constant 0 : index
    %c0_2 = arith.constant 0 : index
    %1 = vector.load %arg1[%c0_1, %c0_2] : memref<32x128xf32, #tpu.memory_space<vmem>>, vector<32x128xf32>
    %cst = arith.constant dense<0.000000e+00> : vector<64x128xf32>
    %2 = tpu.matmul %0, %1, %cst {dimension_numbers = #tpu.dot_dimension_numbers<[1], [0], [0], [1], [0, 0, 1, 1], [], []>, precision = #tpu.contract_precision<fp32>} : vector<64x32xf32>, vector<32x128xf32>, vector<64x128xf32> -> vector<64x128xf32>
    %c0_3 = arith.constant 0 : index
    %c0_4 = arith.constant 0 : index
    %3 = vector.load %arg3[%c0_3, %c0_4] : memref<1x128xf32, #tpu.memory_space<vmem>>, vector<1x128xf32>
    %4 = vector.broadcast %3 : vector<1x128xf32> to vector<64x128xf32>
    %5 = arith.addf %2, %4 : vector<64x128xf32>
    %c0_5 = arith.constant 0 : index
    %c0_6 = arith.constant 0 : index
    %6 = vector.load %arg7[%c0_5, %c0_6] : memref<64x128xf32, #tpu.memory_space<vmem>>, vector<64x128xf32>
    tpu.vector_store %arg7[%c0_5, %c0_6], %5 {strides = array<i32>} : memref<64x128xf32, #tpu.memory_space<vmem>>, vector<64x128xf32>,
    %c0_7 = arith.constant 0 : index
    %c0_8 = arith.constant 0 : index
    %7 = vector.load %arg2[%c0_7, %c0_8] : memref<32x128xf32, #tpu.memory_space<vmem>>, vector<32x128xf32>
    %cst_9 = arith.constant 0.000000e+00 : f32
    %8 = vector.broadcast %cst_9 : f32 to vector<8x32xf32>
    %cst_10 = arith.constant 0.000000e+00 : f32
    %9 = vector.broadcast %cst_10 : f32 to vector<8x32xf32>
    %c0_i32 = arith.constant 0 : i32
    %c8_i32 = arith.constant 8 : i32
    %10 = arith.muli %c0_i32, %c8_i32 : i32
    %11 = tpu.assume_multiple %10, 8 : i32
    %c7_i32 = arith.constant 7 : i32
    %12 = arith.subi %c7_i32, %c0_i32 : i32
    %c8_i32_11 = arith.constant 8 : i32
    %13 = arith.muli %12, %c8_i32_11 : i32
    %14 = tpu.assume_multiple %13, 8 : i32
    %cst_12 = arith.constant dense<0.000000e+00> : vector<8x128xf32>
    %15 = tpu.matmul %8, %7, %cst_12 {dimension_numbers = #tpu.dot_dimension_numbers<[1], [0], [0], [1], [0, 0, 1, 1], [], []>, precision = #tpu.contract_precision<fp32>} : vector<8x32xf32>, vector<32x128xf32>, vector<8x128xf32> -> vector<8x128xf32>
    %16 = arith.index_cast %11 : i32 to index
    %c0_13 = arith.constant 0 : index
    %17 = vector.load %arg7[%16, %c0_13] : memref<64x128xf32, #tpu.memory_space<vmem>>, vector<8x128xf32>
    %18 = arith.addf %15, %17 : vector<8x128xf32>
    %19 = vector.extract_strided_slice %18 {offsets = [0, 0], sizes = [8, 96], strides = [1, 1]} : vector<8x128xf32> to vector<8x96xf32>
    %20 = arith.negf %19 : vector<8x96xf32>
    %21 = math.exp %20 : vector<8x96xf32>
    %cst_14 = arith.constant 1.000000e+00 : f32
    %22 = vector.broadcast %cst_14 : f32 to vector<8x96xf32>
    %23 = arith.addf %22, %21 : vector<8x96xf32>
    %24 = arith.divf %22, %23 : vector<8x96xf32>
    %25 = vector.extract_strided_slice %18 {offsets = [0, 96], sizes = [8, 32], strides = [1, 1]} : vector<8x128xf32> to vector<8x32xf32>
    %26 = math.tanh %25 : vector<8x32xf32>
    %27 = vector.extract_strided_slice %24 {offsets = [0, 0], sizes = [8, 32], strides = [1, 1]} : vector<8x96xf32> to vector<8x32xf32>
    %28 = vector.extract_strided_slice %24 {offsets = [0, 32], sizes = [8, 32], strides = [1, 1]} : vector<8x96xf32> to vector<8x32xf32>
    %29 = vector.extract_strided_slice %24 {offsets = [0, 64], sizes = [8, 32], strides = [1, 1]} : vector<8x96xf32> to vector<8x32xf32>
    %30 = arith.mulf %28, %9 : vector<8x32xf32>
    %31 = arith.mulf %27, %26 : vector<8x32xf32>
    %32 = arith.addf %30, %31 : vector<8x32xf32>
    %33 = math.tanh %32 : vector<8x32xf32>
    %34 = arith.mulf %29, %33 : vector<8x32xf32>
    %35 = vector.extract_strided_slice %34 {offsets = [0, 0], sizes = [8, 16], strides = [1, 1]} : vector<8x32xf32> to vector<8x16xf32>
    %36 = arith.index_cast %11 : i32 to index
    %c0_15 = arith.constant 0 : index
    %37 = vector.load %arg8[%36, %c0_15] : memref<64x32xf32, #tpu.memory_space<vmem>>, vector<8x16xf32>
    tpu.vector_store %arg8[%36, %c0_15], %35 {strides = array<i32>} : memref<64x32xf32, #tpu.memory_space<vmem>>, vector<8x16xf32>,
    %38 = vector.extract_strided_slice %34 {offsets = [0, 16], sizes = [8, 16], strides = [1, 1]} : vector<8x32xf32> to vector<8x16xf32>
    %39 = arith.index_cast %14 : i32 to index
    %c16 = arith.constant 16 : index
    %40 = vector.load %arg8[%39, %c16] : memref<64x32xf32, #tpu.memory_space<vmem>>, vector<8x16xf32>
    tpu.vector_store %arg8[%39, %c16], %38 {strides = array<i32>} : memref<64x32xf32, #tpu.memory_space<vmem>>, vector<8x16xf32>,
    %c1_i32 = arith.constant 1 : i32
    %c8_i32_16 = arith.constant 8 : i32
    %41 = arith.muli %c1_i32, %c8_i32_16 : i32
    %42 = tpu.assume_multiple %41, 8 : i32
    %c7_i32_17 = arith.constant 7 : i32
    %43 = arith.subi %c7_i32_17, %c1_i32 : i32
    %c8_i32_18 = arith.constant 8 : i32
    %44 = arith.muli %43, %c8_i32_18 : i32
    %45 = tpu.assume_multiple %44, 8 : i32
    %cst_19 = arith.constant dense<0.000000e+00> : vector<8x128xf32>
    %46 = tpu.matmul %34, %7, %cst_19 {dimension_numbers = #tpu.dot_dimension_numbers<[1], [0], [0], [1], [0, 0, 1, 1], [], []>, precision = #tpu.contract_precision<fp32>} : vector<8x32xf32>, vector<32x128xf32>, vector<8x128xf32> -> vector<8x128xf32>
    %47 = arith.index_cast %42 : i32 to index
    %c0_20 = arith.constant 0 : index
    %48 = vector.load %arg7[%47, %c0_20] : memref<64x128xf32, #tpu.memory_space<vmem>>, vector<8x128xf32>
    %49 = arith.addf %46, %48 : vector<8x128xf32>
    %50 = vector.extract_strided_slice %49 {offsets = [0, 0], sizes = [8, 96], strides = [1, 1]} : vector<8x128xf32> to vector<8x96xf32>
    %51 = arith.negf %50 : vector<8x96xf32>
    %52 = math.exp %51 : vector<8x96xf32>
    %cst_21 = arith.constant 1.000000e+00 : f32
    %53 = vector.broadcast %cst_21 : f32 to vector<8x96xf32>
    %54 = arith.addf %53, %52 : vector<8x96xf32>
    %55 = arith.divf %53, %54 : vector<8x96xf32>
    %56 = vector.extract_strided_slice %49 {offsets = [0, 96], sizes = [8, 32], strides = [1, 1]} : vector<8x128xf32> to vector<8x32xf32>
    %57 = math.tanh %56 : vector<8x32xf32>
    %58 = vector.extract_strided_slice %55 {offsets = [0, 0], sizes = [8, 32], strides = [1, 1]} : vector<8x96xf32> to vector<8x32xf32>
    %59 = vector.extract_strided_slice %55 {offsets = [0, 32], sizes = [8, 32], strides = [1, 1]} : vector<8x96xf32> to vector<8x32xf32>
    %60 = vector.extract_strided_slice %55 {offsets = [0, 64], sizes = [8, 32], strides = [1, 1]} : vector<8x96xf32> to vector<8x32xf32>
    %61 = arith.mulf %59, %32 : vector<8x32xf32>
    %62 = arith.mulf %58, %57 : vector<8x32xf32>
    %63 = arith.addf %61, %62 : vector<8x32xf32>
    %64 = math.tanh %63 : vector<8x32xf32>
    %65 = arith.mulf %60, %64 : vector<8x32xf32>
    %66 = vector.extract_strided_slice %65 {offsets = [0, 0], sizes = [8, 16], strides = [1, 1]} : vector<8x32xf32> to vector<8x16xf32>
    %67 = arith.index_cast %42 : i32 to index
    %c0_22 = arith.constant 0 : index
    %68 = vector.load %arg8[%67, %c0_22] : memref<64x32xf32, #tpu.memory_space<vmem>>, vector<8x16xf32>
    tpu.vector_store %arg8[%67, %c0_22], %66 {strides = array<i32>} : memref<64x32xf32, #tpu.memory_space<vmem>>, vector<8x16xf32>,
    %69 = vector.extract_strided_slice %65 {offsets = [0, 16], sizes = [8, 16], strides = [1, 1]} : vector<8x32xf32> to vector<8x16xf32>
    %70 = arith.index_cast %45 : i32 to index
    %c16_23 = arith.constant 16 : index
    %71 = vector.load %arg8[%70, %c16_23] : memref<64x32xf32, #tpu.memory_space<vmem>>, vector<8x16xf32>
    tpu.vector_store %arg8[%70, %c16_23], %69 {strides = array<i32>} : memref<64x32xf32, #tpu.memory_space<vmem>>, vector<8x16xf32>,
    %c2_i32 = arith.constant 2 : i32
    %c8_i32_24 = arith.constant 8 : i32
    %72 = arith.muli %c2_i32, %c8_i32_24 : i32
    %73 = tpu.assume_multiple %72, 8 : i32
    %c7_i32_25 = arith.constant 7 : i32
    %74 = arith.subi %c7_i32_25, %c2_i32 : i32
    %c8_i32_26 = arith.constant 8 : i32
    %75 = arith.muli %74, %c8_i32_26 : i32
    %76 = tpu.assume_multiple %75, 8 : i32
    %cst_27 = arith.constant dense<0.000000e+00> : vector<8x128xf32>
    %77 = tpu.matmul %65, %7, %cst_27 {dimension_numbers = #tpu.dot_dimension_numbers<[1], [0], [0], [1], [0, 0, 1, 1], [], []>, precision = #tpu.contract_precision<fp32>} : vector<8x32xf32>, vector<32x128xf32>, vector<8x128xf32> -> vector<8x128xf32>
    %78 = arith.index_cast %73 : i32 to index
    %c0_28 = arith.constant 0 : index
    %79 = vector.load %arg7[%78, %c0_28] : memref<64x128xf32, #tpu.memory_space<vmem>>, vector<8x128xf32>
    %80 = arith.addf %77, %79 : vector<8x128xf32>
    %81 = vector.extract_strided_slice %80 {offsets = [0, 0], sizes = [8, 96], strides = [1, 1]} : vector<8x128xf32> to vector<8x96xf32>
    %82 = arith.negf %81 : vector<8x96xf32>
    %83 = math.exp %82 : vector<8x96xf32>
    %cst_29 = arith.constant 1.000000e+00 : f32
    %84 = vector.broadcast %cst_29 : f32 to vector<8x96xf32>
    %85 = arith.addf %84, %83 : vector<8x96xf32>
    %86 = arith.divf %84, %85 : vector<8x96xf32>
    %87 = vector.extract_strided_slice %80 {offsets = [0, 96], sizes = [8, 32], strides = [1, 1]} : vector<8x128xf32> to vector<8x32xf32>
    %88 = math.tanh %87 : vector<8x32xf32>
    %89 = vector.extract_strided_slice %86 {offsets = [0, 0], sizes = [8, 32], strides = [1, 1]} : vector<8x96xf32> to vector<8x32xf32>
    %90 = vector.extract_strided_slice %86 {offsets = [0, 32], sizes = [8, 32], strides = [1, 1]} : vector<8x96xf32> to vector<8x32xf32>
    %91 = vector.extract_strided_slice %86 {offsets = [0, 64], sizes = [8, 32], strides = [1, 1]} : vector<8x96xf32> to vector<8x32xf32>
    %92 = arith.mulf %90, %63 : vector<8x32xf32>
    %93 = arith.mulf %89, %88 : vector<8x32xf32>
    %94 = arith.addf %92, %93 : vector<8x32xf32>
    %95 = math.tanh %94 : vector<8x32xf32>
    %96 = arith.mulf %91, %95 : vector<8x32xf32>
    %97 = vector.extract_strided_slice %96 {offsets = [0, 0], sizes = [8, 16], strides = [1, 1]} : vector<8x32xf32> to vector<8x16xf32>
    %98 = arith.index_cast %73 : i32 to index
    %c0_30 = arith.constant 0 : index
    %99 = vector.load %arg8[%98, %c0_30] : memref<64x32xf32, #tpu.memory_space<vmem>>, vector<8x16xf32>
    tpu.vector_store %arg8[%98, %c0_30], %97 {strides = array<i32>} : memref<64x32xf32, #tpu.memory_space<vmem>>, vector<8x16xf32>,
    %100 = vector.extract_strided_slice %96 {offsets = [0, 16], sizes = [8, 16], strides = [1, 1]} : vector<8x32xf32> to vector<8x16xf32>
    %101 = arith.index_cast %76 : i32 to index
    %c16_31 = arith.constant 16 : index
    %102 = vector.load %arg8[%101, %c16_31] : memref<64x32xf32, #tpu.memory_space<vmem>>, vector<8x16xf32>
    tpu.vector_store %arg8[%101, %c16_31], %100 {strides = array<i32>} : memref<64x32xf32, #tpu.memory_space<vmem>>, vector<8x16xf32>,
    %c3_i32 = arith.constant 3 : i32
    %c8_i32_32 = arith.constant 8 : i32
    %103 = arith.muli %c3_i32, %c8_i32_32 : i32
    %104 = tpu.assume_multiple %103, 8 : i32
    %c7_i32_33 = arith.constant 7 : i32
    %105 = arith.subi %c7_i32_33, %c3_i32 : i32
    %c8_i32_34 = arith.constant 8 : i32
    %106 = arith.muli %105, %c8_i32_34 : i32
    %107 = tpu.assume_multiple %106, 8 : i32
    %cst_35 = arith.constant dense<0.000000e+00> : vector<8x128xf32>
    %108 = tpu.matmul %96, %7, %cst_35 {dimension_numbers = #tpu.dot_dimension_numbers<[1], [0], [0], [1], [0, 0, 1, 1], [], []>, precision = #tpu.contract_precision<fp32>} : vector<8x32xf32>, vector<32x128xf32>, vector<8x128xf32> -> vector<8x128xf32>
    %109 = arith.index_cast %104 : i32 to index
    %c0_36 = arith.constant 0 : index
    %110 = vector.load %arg7[%109, %c0_36] : memref<64x128xf32, #tpu.memory_space<vmem>>, vector<8x128xf32>
    %111 = arith.addf %108, %110 : vector<8x128xf32>
    %112 = vector.extract_strided_slice %111 {offsets = [0, 0], sizes = [8, 96], strides = [1, 1]} : vector<8x128xf32> to vector<8x96xf32>
    %113 = arith.negf %112 : vector<8x96xf32>
    %114 = math.exp %113 : vector<8x96xf32>
    %cst_37 = arith.constant 1.000000e+00 : f32
    %115 = vector.broadcast %cst_37 : f32 to vector<8x96xf32>
    %116 = arith.addf %115, %114 : vector<8x96xf32>
    %117 = arith.divf %115, %116 : vector<8x96xf32>
    %118 = vector.extract_strided_slice %111 {offsets = [0, 96], sizes = [8, 32], strides = [1, 1]} : vector<8x128xf32> to vector<8x32xf32>
    %119 = math.tanh %118 : vector<8x32xf32>
    %120 = vector.extract_strided_slice %117 {offsets = [0, 0], sizes = [8, 32], strides = [1, 1]} : vector<8x96xf32> to vector<8x32xf32>
    %121 = vector.extract_strided_slice %117 {offsets = [0, 32], sizes = [8, 32], strides = [1, 1]} : vector<8x96xf32> to vector<8x32xf32>
    %122 = vector.extract_strided_slice %117 {offsets = [0, 64], sizes = [8, 32], strides = [1, 1]} : vector<8x96xf32> to vector<8x32xf32>
    %123 = arith.mulf %121, %94 : vector<8x32xf32>
    %124 = arith.mulf %120, %119 : vector<8x32xf32>
    %125 = arith.addf %123, %124 : vector<8x32xf32>
    %126 = math.tanh %125 : vector<8x32xf32>
    %127 = arith.mulf %122, %126 : vector<8x32xf32>
    %128 = vector.extract_strided_slice %127 {offsets = [0, 0], sizes = [8, 16], strides = [1, 1]} : vector<8x32xf32> to vector<8x16xf32>
    %129 = arith.index_cast %104 : i32 to index
    %c0_38 = arith.constant 0 : index
    %130 = vector.load %arg8[%129, %c0_38] : memref<64x32xf32, #tpu.memory_space<vmem>>, vector<8x16xf32>
    tpu.vector_store %arg8[%129, %c0_38], %128 {strides = array<i32>} : memref<64x32xf32, #tpu.memory_space<vmem>>, vector<8x16xf32>,
    %131 = vector.extract_strided_slice %127 {offsets = [0, 16], sizes = [8, 16], strides = [1, 1]} : vector<8x32xf32> to vector<8x16xf32>
    %132 = arith.index_cast %107 : i32 to index
    %c16_39 = arith.constant 16 : index
    %133 = vector.load %arg8[%132, %c16_39] : memref<64x32xf32, #tpu.memory_space<vmem>>, vector<8x16xf32>
    tpu.vector_store %arg8[%132, %c16_39], %131 {strides = array<i32>} : memref<64x32xf32, #tpu.memory_space<vmem>>, vector<8x16xf32>,
    %c4_i32 = arith.constant 4 : i32
    %c8_i32_40 = arith.constant 8 : i32
    %134 = arith.muli %c4_i32, %c8_i32_40 : i32
    %135 = tpu.assume_multiple %134, 8 : i32
    %c7_i32_41 = arith.constant 7 : i32
    %136 = arith.subi %c7_i32_41, %c4_i32 : i32
    %c8_i32_42 = arith.constant 8 : i32
    %137 = arith.muli %136, %c8_i32_42 : i32
    %138 = tpu.assume_multiple %137, 8 : i32
    %cst_43 = arith.constant dense<0.000000e+00> : vector<8x128xf32>
    %139 = tpu.matmul %127, %7, %cst_43 {dimension_numbers = #tpu.dot_dimension_numbers<[1], [0], [0], [1], [0, 0, 1, 1], [], []>, precision = #tpu.contract_precision<fp32>} : vector<8x32xf32>, vector<32x128xf32>, vector<8x128xf32> -> vector<8x128xf32>
    %140 = arith.index_cast %135 : i32 to index
    %c0_44 = arith.constant 0 : index
    %141 = vector.load %arg7[%140, %c0_44] : memref<64x128xf32, #tpu.memory_space<vmem>>, vector<8x128xf32>
    %142 = arith.addf %139, %141 : vector<8x128xf32>
    %143 = vector.extract_strided_slice %142 {offsets = [0, 0], sizes = [8, 96], strides = [1, 1]} : vector<8x128xf32> to vector<8x96xf32>
    %144 = arith.negf %143 : vector<8x96xf32>
    %145 = math.exp %144 : vector<8x96xf32>
    %cst_45 = arith.constant 1.000000e+00 : f32
    %146 = vector.broadcast %cst_45 : f32 to vector<8x96xf32>
    %147 = arith.addf %146, %145 : vector<8x96xf32>
    %148 = arith.divf %146, %147 : vector<8x96xf32>
    %149 = vector.extract_strided_slice %142 {offsets = [0, 96], sizes = [8, 32], strides = [1, 1]} : vector<8x128xf32> to vector<8x32xf32>
    %150 = math.tanh %149 : vector<8x32xf32>
    %151 = vector.extract_strided_slice %148 {offsets = [0, 0], sizes = [8, 32], strides = [1, 1]} : vector<8x96xf32> to vector<8x32xf32>
    %152 = vector.extract_strided_slice %148 {offsets = [0, 32], sizes = [8, 32], strides = [1, 1]} : vector<8x96xf32> to vector<8x32xf32>
    %153 = vector.extract_strided_slice %148 {offsets = [0, 64], sizes = [8, 32], strides = [1, 1]} : vector<8x96xf32> to vector<8x32xf32>
    %154 = arith.mulf %152, %125 : vector<8x32xf32>
    %155 = arith.mulf %151, %150 : vector<8x32xf32>
    %156 = arith.addf %154, %155 : vector<8x32xf32>
    %157 = math.tanh %156 : vector<8x32xf32>
    %158 = arith.mulf %153, %157 : vector<8x32xf32>
    %159 = vector.extract_strided_slice %158 {offsets = [0, 0], sizes = [8, 16], strides = [1, 1]} : vector<8x32xf32> to vector<8x16xf32>
    %160 = arith.index_cast %135 : i32 to index
    %c0_46 = arith.constant 0 : index
    %161 = vector.load %arg8[%160, %c0_46] : memref<64x32xf32, #tpu.memory_space<vmem>>, vector<8x16xf32>
    tpu.vector_store %arg8[%160, %c0_46], %159 {strides = array<i32>} : memref<64x32xf32, #tpu.memory_space<vmem>>, vector<8x16xf32>,
    %162 = vector.extract_strided_slice %158 {offsets = [0, 16], sizes = [8, 16], strides = [1, 1]} : vector<8x32xf32> to vector<8x16xf32>
    %163 = arith.index_cast %138 : i32 to index
    %c16_47 = arith.constant 16 : index
    %164 = vector.load %arg8[%163, %c16_47] : memref<64x32xf32, #tpu.memory_space<vmem>>, vector<8x16xf32>
    tpu.vector_store %arg8[%163, %c16_47], %162 {strides = array<i32>} : memref<64x32xf32, #tpu.memory_space<vmem>>, vector<8x16xf32>,
    %c5_i32 = arith.constant 5 : i32
    %c8_i32_48 = arith.constant 8 : i32
    %165 = arith.muli %c5_i32, %c8_i32_48 : i32
    %166 = tpu.assume_multiple %165, 8 : i32
    %c7_i32_49 = arith.constant 7 : i32
    %167 = arith.subi %c7_i32_49, %c5_i32 : i32
    %c8_i32_50 = arith.constant 8 : i32
    %168 = arith.muli %167, %c8_i32_50 : i32
    %169 = tpu.assume_multiple %168, 8 : i32
    %cst_51 = arith.constant dense<0.000000e+00> : vector<8x128xf32>
    %170 = tpu.matmul %158, %7, %cst_51 {dimension_numbers = #tpu.dot_dimension_numbers<[1], [0], [0], [1], [0, 0, 1, 1], [], []>, precision = #tpu.contract_precision<fp32>} : vector<8x32xf32>, vector<32x128xf32>, vector<8x128xf32> -> vector<8x128xf32>
    %171 = arith.index_cast %166 : i32 to index
    %c0_52 = arith.constant 0 : index
    %172 = vector.load %arg7[%171, %c0_52] : memref<64x128xf32, #tpu.memory_space<vmem>>, vector<8x128xf32>
    %173 = arith.addf %170, %172 : vector<8x128xf32>
    %174 = vector.extract_strided_slice %173 {offsets = [0, 0], sizes = [8, 96], strides = [1, 1]} : vector<8x128xf32> to vector<8x96xf32>
    %175 = arith.negf %174 : vector<8x96xf32>
    %176 = math.exp %175 : vector<8x96xf32>
    %cst_53 = arith.constant 1.000000e+00 : f32
    %177 = vector.broadcast %cst_53 : f32 to vector<8x96xf32>
    %178 = arith.addf %177, %176 : vector<8x96xf32>
    %179 = arith.divf %177, %178 : vector<8x96xf32>
    %180 = vector.extract_strided_slice %173 {offsets = [0, 96], sizes = [8, 32], strides = [1, 1]} : vector<8x128xf32> to vector<8x32xf32>
    %181 = math.tanh %180 : vector<8x32xf32>
    %182 = vector.extract_strided_slice %179 {offsets = [0, 0], sizes = [8, 32], strides = [1, 1]} : vector<8x96xf32> to vector<8x32xf32>
    %183 = vector.extract_strided_slice %179 {offsets = [0, 32], sizes = [8, 32], strides = [1, 1]} : vector<8x96xf32> to vector<8x32xf32>
    %184 = vector.extract_strided_slice %179 {offsets = [0, 64], sizes = [8, 32], strides = [1, 1]} : vector<8x96xf32> to vector<8x32xf32>
    %185 = arith.mulf %183, %156 : vector<8x32xf32>
    %186 = arith.mulf %182, %181 : vector<8x32xf32>
    %187 = arith.addf %185, %186 : vector<8x32xf32>
    %188 = math.tanh %187 : vector<8x32xf32>
    %189 = arith.mulf %184, %188 : vector<8x32xf32>
    %190 = vector.extract_strided_slice %189 {offsets = [0, 0], sizes = [8, 16], strides = [1, 1]} : vector<8x32xf32> to vector<8x16xf32>
    %191 = arith.index_cast %166 : i32 to index
    %c0_54 = arith.constant 0 : index
    %192 = vector.load %arg8[%191, %c0_54] : memref<64x32xf32, #tpu.memory_space<vmem>>, vector<8x16xf32>
    tpu.vector_store %arg8[%191, %c0_54], %190 {strides = array<i32>} : memref<64x32xf32, #tpu.memory_space<vmem>>, vector<8x16xf32>,
    %193 = vector.extract_strided_slice %189 {offsets = [0, 16], sizes = [8, 16], strides = [1, 1]} : vector<8x32xf32> to vector<8x16xf32>
    %194 = arith.index_cast %169 : i32 to index
    %c16_55 = arith.constant 16 : index
    %195 = vector.load %arg8[%194, %c16_55] : memref<64x32xf32, #tpu.memory_space<vmem>>, vector<8x16xf32>
    tpu.vector_store %arg8[%194, %c16_55], %193 {strides = array<i32>} : memref<64x32xf32, #tpu.memory_space<vmem>>, vector<8x16xf32>,
    %c6_i32 = arith.constant 6 : i32
    %c8_i32_56 = arith.constant 8 : i32
    %196 = arith.muli %c6_i32, %c8_i32_56 : i32
    %197 = tpu.assume_multiple %196, 8 : i32
    %c7_i32_57 = arith.constant 7 : i32
    %198 = arith.subi %c7_i32_57, %c6_i32 : i32
    %c8_i32_58 = arith.constant 8 : i32
    %199 = arith.muli %198, %c8_i32_58 : i32
    %200 = tpu.assume_multiple %199, 8 : i32
    %cst_59 = arith.constant dense<0.000000e+00> : vector<8x128xf32>
    %201 = tpu.matmul %189, %7, %cst_59 {dimension_numbers = #tpu.dot_dimension_numbers<[1], [0], [0], [1], [0, 0, 1, 1], [], []>, precision = #tpu.contract_precision<fp32>} : vector<8x32xf32>, vector<32x128xf32>, vector<8x128xf32> -> vector<8x128xf32>
    %202 = arith.index_cast %197 : i32 to index
    %c0_60 = arith.constant 0 : index
    %203 = vector.load %arg7[%202, %c0_60] : memref<64x128xf32, #tpu.memory_space<vmem>>, vector<8x128xf32>
    %204 = arith.addf %201, %203 : vector<8x128xf32>
    %205 = vector.extract_strided_slice %204 {offsets = [0, 0], sizes = [8, 96], strides = [1, 1]} : vector<8x128xf32> to vector<8x96xf32>
    %206 = arith.negf %205 : vector<8x96xf32>
    %207 = math.exp %206 : vector<8x96xf32>
    %cst_61 = arith.constant 1.000000e+00 : f32
    %208 = vector.broadcast %cst_61 : f32 to vector<8x96xf32>
    %209 = arith.addf %208, %207 : vector<8x96xf32>
    %210 = arith.divf %208, %209 : vector<8x96xf32>
    %211 = vector.extract_strided_slice %204 {offsets = [0, 96], sizes = [8, 32], strides = [1, 1]} : vector<8x128xf32> to vector<8x32xf32>
    %212 = math.tanh %211 : vector<8x32xf32>
    %213 = vector.extract_strided_slice %210 {offsets = [0, 0], sizes = [8, 32], strides = [1, 1]} : vector<8x96xf32> to vector<8x32xf32>
    %214 = vector.extract_strided_slice %210 {offsets = [0, 32], sizes = [8, 32], strides = [1, 1]} : vector<8x96xf32> to vector<8x32xf32>
    %215 = vector.extract_strided_slice %210 {offsets = [0, 64], sizes = [8, 32], strides = [1, 1]} : vector<8x96xf32> to vector<8x32xf32>
    %216 = arith.mulf %214, %187 : vector<8x32xf32>
    %217 = arith.mulf %213, %212 : vector<8x32xf32>
    %218 = arith.addf %216, %217 : vector<8x32xf32>
    %219 = math.tanh %218 : vector<8x32xf32>
    %220 = arith.mulf %215, %219 : vector<8x32xf32>
    %221 = vector.extract_strided_slice %220 {offsets = [0, 0], sizes = [8, 16], strides = [1, 1]} : vector<8x32xf32> to vector<8x16xf32>
    %222 = arith.index_cast %197 : i32 to index
    %c0_62 = arith.constant 0 : index
    %223 = vector.load %arg8[%222, %c0_62] : memref<64x32xf32, #tpu.memory_space<vmem>>, vector<8x16xf32>
    tpu.vector_store %arg8[%222, %c0_62], %221 {strides = array<i32>} : memref<64x32xf32, #tpu.memory_space<vmem>>, vector<8x16xf32>,
    %224 = vector.extract_strided_slice %220 {offsets = [0, 16], sizes = [8, 16], strides = [1, 1]} : vector<8x32xf32> to vector<8x16xf32>
    %225 = arith.index_cast %200 : i32 to index
    %c16_63 = arith.constant 16 : index
    %226 = vector.load %arg8[%225, %c16_63] : memref<64x32xf32, #tpu.memory_space<vmem>>, vector<8x16xf32>
    tpu.vector_store %arg8[%225, %c16_63], %224 {strides = array<i32>} : memref<64x32xf32, #tpu.memory_space<vmem>>, vector<8x16xf32>,
    %c7_i32_64 = arith.constant 7 : i32
    %c8_i32_65 = arith.constant 8 : i32
    %227 = arith.muli %c7_i32_64, %c8_i32_65 : i32
    %228 = tpu.assume_multiple %227, 8 : i32
    %c7_i32_66 = arith.constant 7 : i32
    %229 = arith.subi %c7_i32_66, %c7_i32_64 : i32
    %c8_i32_67 = arith.constant 8 : i32
    %230 = arith.muli %229, %c8_i32_67 : i32
    %231 = tpu.assume_multiple %230, 8 : i32
    %cst_68 = arith.constant dense<0.000000e+00> : vector<8x128xf32>
    %232 = tpu.matmul %220, %7, %cst_68 {dimension_numbers = #tpu.dot_dimension_numbers<[1], [0], [0], [1], [0, 0, 1, 1], [], []>, precision = #tpu.contract_precision<fp32>} : vector<8x32xf32>, vector<32x128xf32>, vector<8x128xf32> -> vector<8x128xf32>
    %233 = arith.index_cast %228 : i32 to index
    %c0_69 = arith.constant 0 : index
    %234 = vector.load %arg7[%233, %c0_69] : memref<64x128xf32, #tpu.memory_space<vmem>>, vector<8x128xf32>
    %235 = arith.addf %232, %234 : vector<8x128xf32>
    %236 = vector.extract_strided_slice %235 {offsets = [0, 0], sizes = [8, 96], strides = [1, 1]} : vector<8x128xf32> to vector<8x96xf32>
    %237 = arith.negf %236 : vector<8x96xf32>
    %238 = math.exp %237 : vector<8x96xf32>
    %cst_70 = arith.constant 1.000000e+00 : f32
    %239 = vector.broadcast %cst_70 : f32 to vector<8x96xf32>
    %240 = arith.addf %239, %238 : vector<8x96xf32>
    %241 = arith.divf %239, %240 : vector<8x96xf32>
    %242 = vector.extract_strided_slice %235 {offsets = [0, 96], sizes = [8, 32], strides = [1, 1]} : vector<8x128xf32> to vector<8x32xf32>
    %243 = math.tanh %242 : vector<8x32xf32>
    %244 = vector.extract_strided_slice %241 {offsets = [0, 0], sizes = [8, 32], strides = [1, 1]} : vector<8x96xf32> to vector<8x32xf32>
    %245 = vector.extract_strided_slice %241 {offsets = [0, 32], sizes = [8, 32], strides = [1, 1]} : vector<8x96xf32> to vector<8x32xf32>
    %246 = vector.extract_strided_slice %241 {offsets = [0, 64], sizes = [8, 32], strides = [1, 1]} : vector<8x96xf32> to vector<8x32xf32>
    %247 = arith.mulf %245, %218 : vector<8x32xf32>
    %248 = arith.mulf %244, %243 : vector<8x32xf32>
    %249 = arith.addf %247, %248 : vector<8x32xf32>
    %250 = math.tanh %249 : vector<8x32xf32>
    %251 = arith.mulf %246, %250 : vector<8x32xf32>
    %252 = vector.extract_strided_slice %251 {offsets = [0, 0], sizes = [8, 16], strides = [1, 1]} : vector<8x32xf32> to vector<8x16xf32>
    %253 = arith.index_cast %228 : i32 to index
    %c0_71 = arith.constant 0 : index
    %254 = vector.load %arg8[%253, %c0_71] : memref<64x32xf32, #tpu.memory_space<vmem>>, vector<8x16xf32>
    tpu.vector_store %arg8[%253, %c0_71], %252 {strides = array<i32>} : memref<64x32xf32, #tpu.memory_space<vmem>>, vector<8x16xf32>,
    %255 = vector.extract_strided_slice %251 {offsets = [0, 16], sizes = [8, 16], strides = [1, 1]} : vector<8x32xf32> to vector<8x16xf32>
    %256 = arith.index_cast %231 : i32 to index
    %c16_72 = arith.constant 16 : index
    %257 = vector.load %arg8[%256, %c16_72] : memref<64x32xf32, #tpu.memory_space<vmem>>, vector<8x16xf32>
    tpu.vector_store %arg8[%256, %c16_72], %255 {strides = array<i32>} : memref<64x32xf32, #tpu.memory_space<vmem>>, vector<8x16xf32>,
    %c8_i32_73 = arith.constant 8 : i32
    %c0_74 = arith.constant 0 : index
    %c0_75 = arith.constant 0 : index
    %258 = vector.load %arg8[%c0_74, %c0_75] : memref<64x32xf32, #tpu.memory_space<vmem>>, vector<64x32xf32>
    %c0_76 = arith.constant 0 : index
    %c0_77 = arith.constant 0 : index
    %259 = vector.load %arg4[%c0_76, %c0_77] : memref<32x128xf32, #tpu.memory_space<vmem>>, vector<32x128xf32>
    %cst_78 = arith.constant dense<0.000000e+00> : vector<64x128xf32>
    %260 = tpu.matmul %258, %259, %cst_78 {dimension_numbers = #tpu.dot_dimension_numbers<[1], [0], [0], [1], [0, 0, 1, 1], [], []>, precision = #tpu.contract_precision<fp32>} : vector<64x32xf32>, vector<32x128xf32>, vector<64x128xf32> -> vector<64x128xf32>
    %c0_79 = arith.constant 0 : index
    %c0_80 = arith.constant 0 : index
    %261 = vector.load %arg5[%c0_79, %c0_80] : memref<1x128xf32, #tpu.memory_space<vmem>>, vector<1x128xf32>
    %262 = vector.broadcast %261 : vector<1x128xf32> to vector<64x128xf32>
    %263 = arith.addf %260, %262 : vector<64x128xf32>
    %c0_81 = arith.constant 0 : index
    %c0_82 = arith.constant 0 : index
    %264 = vector.load %arg6[%c0_81, %c0_82] : memref<64x128xf32, #tpu.memory_space<vmem>>, vector<64x128xf32>
    tpu.vector_store %arg6[%c0_81, %c0_82], %263 {strides = array<i32>} : memref<64x128xf32, #tpu.memory_space<vmem>>, vector<64x128xf32>,
    return
  }
}

</mosaic_0001>

<bundles_post_ra>
// kernel: tpu_custom_call.1
= control target key start
LH: loop header
LB: loop body
LE: loop exit
PB: predicated region body
PF: predicated region fallthrough
CT: control target
= control target key end

     0   :  { %vm43_vm0 = vcmask 261120   ;;  %s8293_s0 = inlined_call_operand.vmem [shape: f32[64,32], index: 0, kind: input, shape index: {}]   ;;  %s8294_s1 = inlined_call_operand.vmem [shape: f32[32,128], index: 1, kind: input, shape index: {}]   ;;  %s8295_s2 = inlined_call_operand.vmem [shape: f32[32,128], index: 2, kind: input, shape index: {}]   ;;  %s8296_s3 = inlined_call_operand.vmem [shape: f32[1,128], index: 3, kind: input, shape index: {}]   ;;  %s8297_s4 = inlined_call_operand.vmem [shape: f32[32,128], index: 4, kind: input, shape index: {}]   ;;  %s8298_s5 = inlined_call_operand.vmem [shape: f32[1,128], index: 5, kind: input, shape index: {}]   ;;  %s8299_s6 = inlined_call_operand.hbm [shape: f32[64,128], index: 6, kind: output, shape index: {}]  }
   0x1   :  { %v35_v0 = vld [vmem:[%s8294_s1 + $0x18] sm:$0xff]  ;;  %v34_v1 = vld [vmem:[%s8294_s1 + $0x10] sm:$0xff]  ;;  %v33_v2 = vld [vmem:[%s8294_s1 + $0x8] sm:$0xff] }
   0x2   :  { %v7186_v3 = vand.u32 4294901760, %v35_v0  ;;  %v7188_v4 = vand.u32 4294901760, %v34_v1  ;;  %v7190_v5 = vand.u32 4294901760, %v33_v2  ;;  %v32_v6 = vld [vmem:[%s8294_s1] sm:$0xff]  ;;  %v25_v8 = vld [vmem:[%s8293_s0 + $0x8] sm:$0xff]  ;;  %v26_v12 = vld [vmem:[%s8293_s0 + $0x10] sm:$0xff] }
   0x3   :  { %v24_v7 = vld [vmem:[%s8293_s0] sm:$0xff]  ;;  %v7201_v9 = vand.u32 4294901760, %v32_v6  ;;  %v48_v11 = vsel %vm43_vm0, %v25_v8, 0  ;;  %v27_v13 = vld [vmem:[%s8293_s0 + $0x18] sm:$0xff]  ;;  %v51_v19 = vsel %vm43_vm0, %v26_v12, 0 }
   0x4   :  { %v45_v10 = vsel %vm43_vm0, %v24_v7, 0  ;;  %6274 = vmatprep.subr.mxu0 %v7186_v3  ;;  %v7213_v14 = vsub.f32 %v35_v0, %v7186_v3  ;;  %v7217_v16 = vand.u32 4294901760, %v48_v11  ;;  %v7220_v17 = vsub.f32 %v34_v1, %v7188_v4 }
   0x5   :  { %v7215_v15 = vand.u32 4294901760, %v45_v10  ;;  %6275 = vmatpush3.msra.mxu0 %v7186_v3  ;;  %v7224_v18 = vsub.f32 %v33_v2, %v7190_v5  ;;  %v54_v20 = vsel %vm43_vm0, %v27_v13, 0  ;;  %v7229_v21 = vsub.f32 %v32_v6, %v7201_v9 }
   0x6   :  { %6276 = vmatprep.subr.mxu0 %v7188_v4  ;;  %v7233_v22 = vand.u32 4294901760, %v7213_v14  ;;  %v7239_v24 = vsub.f32 %v48_v11, %v7217_v16  ;;  %v7242_v25 = vand.u32 4294901760, %v7220_v17 }
   0x7   :  { %v7236_v23 = vsub.f32 %v45_v10, %v7215_v15  ;;  %6302 = vmatprep.mubr.f32.mxu1 %v7215_v15 }
   0x8   :  { %11 = vsyncpa [#allocation5], 0  ;;  %6277 = vmatpush3.msra.mxu0 %v7188_v4  ;;  %v7247_v26 = vand.u32 4294901760, %v7224_v18  ;;  %v7249_v27 = vand.u32 4294901760, %v51_v19  ;;  %v7251_v28 = vand.u32 4294901760, %v54_v20  ;;  %v7254_v29 = vand.u32 4294901760, %v7229_v21 }
   0x9   :  { %6278 = vmatprep.subr.mxu0 %v7190_v5  ;;  %v245_v30 = vsub.f32 %v7213_v14, %v7233_v22  ;;  %v139_v31 = vand.u32 4294901760, %v7236_v23  ;;  %v149_v32 = vand.u32 4294901760, %v7239_v24  ;;  %v252_v33 = vsub.f32 %v7220_v17, %v7242_v25  ;;  %v28_v38 = vld [vmem:[%s8293_s0 + $0x20] sm:$0xff]  ;;  %v29_v39 = vld [vmem:[%s8293_s0 + $0x28] sm:$0xff]  ;;  %v30_v47 = vld [vmem:[%s8293_s0 + $0x30] sm:$0xff]  ;;  %s7138_s28 = smov 64  }
   0xa   :  { %6279 = vmatpush3.msra.mxu0 %v7190_v5  ;;  %v259_v34 = vsub.f32 %v7224_v18, %v7247_v26  ;;  %v7267_v35 = vsub.f32 %v51_v19, %v7249_v27  ;;  %v7270_v36 = vsub.f32 %v54_v20, %v7251_v28  ;;  %v266_v37 = vsub.f32 %v7229_v21, %v7254_v29  ;;  %v31_v48 = vld [vmem:[%s8293_s0 + $0x38] sm:$0xff] }
   0xb   :  { %6280 = vmatprep.subr.mxu0 %v7201_v9  ;;  %v246_v40 = vand.u32 4294901760, %v245_v30  ;;  %v140_v41 = vsub.f32 %v7236_v23, %v139_v31  ;;  %v150_v42 = vsub.f32 %v7239_v24, %v149_v32  ;;  %v253_v43 = vand.u32 4294901760, %v252_v33 }
   0xc   :  { %6281 = vmatpush3.msra.mxu0 %v7201_v9  ;;  %v260_v44 = vand.u32 4294901760, %v259_v34  ;;  %v159_v45 = vand.u32 4294901760, %v7267_v35  ;;  %v169_v46 = vand.u32 4294901760, %v7270_v36  ;;  %v57_v51 = vsel %vm43_vm0, %v28_v38, 0 }
   0xd   :  { %6294 = vmatprep.subr.mxu1 %v246_v40  ;;  %v141_v49 = vand.u32 4294901760, %v140_v41  ;;  %v151_v50 = vand.u32 4294901760, %v150_v42  ;;  %6314 = vmatprep.subr.mxu0 %v7213_v14  ;;  %v60_v52 = vsel %vm43_vm0, %v29_v39, 0  ;;  %v7305_v55 = vand.u32 4294901760, %v57_v51  ;;  %v7572_v41 = vld [vmem:[%s8296_s3] ss:$0 sm:$0xff] }
   0xe   :  { %6295 = vmatpush3.msra.mxu1 %v246_v40  ;;  %v160_v53 = vsub.f32 %v7267_v35, %v159_v45  ;;  %v170_v54 = vsub.f32 %v7270_v36, %v169_v46  ;;  %v7307_v56 = vand.u32 4294901760, %v60_v52  ;;  %v267_v57 = vand.u32 4294901760, %v266_v37  ;;  %s7137_s3 = smov 32  }
   0xf   :  { %6282 = vmatprep.mubr.f32.mxu0 %v141_v49  ;;  %6296 = vmatprep.subr.mxu1 %v253_v43  ;;  %v63_v58 = vsel %vm43_vm0, %v30_v47, 0  ;;  %v66_v59 = vsel %vm43_vm0, %v31_v48, 0  ;;  %v7312_v62 = vsub.f32 %v57_v51, %v7305_v55  ;;  %vm7136_vm1 = vmmov 0  }
  0x10   :  { %6283 = vmatmul.mubr.f32.vlgmr.msra.gmra.mxu0 %v151_v50  ;;  %6297 = vmatpush3.msra.mxu1 %v253_v43  ;;  %v161_v60 = vand.u32 4294901760, %v160_v53  ;;  %v171_v61 = vand.u32 4294901760, %v170_v54  ;;  %v7315_v63 = vsub.f32 %v60_v52, %v7307_v56  ;;  %v7318_v0 = vand.u32 4294901760, %v63_v58 }
  0x11   :  { %6298 = vmatprep.subr.mxu1 %v260_v44  ;;  %6315 = vmatpush3.msra.mxu0 %v7213_v14  ;;  %v7320_v1 = vand.u32 4294901760, %v66_v59  ;;  %v179_v2 = vand.u32 4294901760, %v7312_v62  ;;  %vm1383_vm2 = vcmask 130048   ;;  %vm1386_vm3 = vcmask 261248  }
  0x12   :  { %6285 = vmatprep.mubr.f32.mxu0 %v161_v60  ;;  %6299 = vmatpush3.msra.mxu1 %v260_v44  ;;  %v189_v6 = vand.u32 4294901760, %v7315_v63  ;;  %v7326_v7 = vsub.f32 %v63_v58, %v7318_v0 }
  0x13   :  { %6300 = vmatprep.subr.mxu1 %v267_v57  ;;  %6316 = vmatprep.subr.mxu0 %v7220_v17  ;;  %v7329_v8 = vsub.f32 %v66_v59, %v7320_v1  ;;  %v180_v10 = vsub.f32 %v7312_v62, %v179_v2 }
  0x14   :  { %6286 = vmatmul.mubr.f32.gmra.mxu0 %v171_v61  ;;  %6301 = vmatpush3.msra.mxu1 %v267_v57  ;;  %v190_v11 = vsub.f32 %v7315_v63, %v189_v6  ;;  %v199_v12 = vand.u32 4294901760, %v7326_v7 }
  0x15   :  { %6303 = vmatmul.mubr.f32.vlgmr.msra.gmra.mxu1 %v7217_v16  ;;  %6334 = vmatprep.subr.mxu1 %v7186_v3  ;;  %v209_v13 = vand.u32 4294901760, %v7329_v8  ;;  %v181_v14 = vand.u32 4294901760, %v180_v10 }
  0x16   :  { %6335 = vmatpush3.msra.mxu1 %v7186_v3  ;;  %v191_v19 = vand.u32 4294901760, %v190_v11  ;;  %6305 = vmatprep.mubr.f32.mxu1 %v7249_v27  ;;  %v200_v20 = vsub.f32 %v7326_v7, %v199_v12 }
  0x17   :  { %6317 = vmatpush3.msra.mxu0 %v7220_v17  ;;  %6336 = vmatprep.subr.mxu1 %v7188_v4  ;;  %v210_v30 = vsub.f32 %v7329_v8, %v209_v13  ;;  %v865_v17 = vld [vmem:[%s8295_s2 + $0x18] sm:$0xff] }
  0x18   :  { %6288 = vmatprep.mubr.f32.mxu0 %v181_v14  ;;  %6337 = vmatpush3.msra.mxu1 %v7188_v4  ;;  %v201_v33 = vand.u32 4294901760, %v200_v20 }
  0x19   :  { %6289 = vmatmul.mubr.f32.gmra.mxu0 %v191_v19  ;;  %6306 = vmatmul.mubr.f32.gmra.mxu1 %v7251_v28  ;;  %v211_v34 = vand.u32 4294901760, %v210_v30 }
  0x1a   :  { %6318 = vmatprep.subr.mxu0 %v7224_v18  ;;  %6308 = vmatprep.mubr.f32.mxu1 %v7305_v55 }
  0x1b   :  { %6291 = vmatprep.mubr.f32.mxu0 %v201_v33  ;;  %6319 = vmatpush3.msra.mxu0 %v7224_v18  ;;  %v7372_v18 = vand.u32 4294901760, %v865_v17 }
  0x1c   :  { %6320 = vmatprep.subr.mxu0 %v7229_v21  ;;  %6338 = vmatprep.subr.mxu1 %v7190_v5 }
  0x1d   :  { %6292 = vmatmul.mubr.f32.gmra.mxu0 %v211_v34  ;;  %6309 = vmatmul.mubr.f32.gmra.mxu1 %v7307_v56 }
  0x1e   :  { %6321 = vmatpush3.msra.mxu0 %v7229_v21  ;;  %6322 = vmatprep.mubr.f32.mxu0 %v7236_v23  ;;  %v864_v21 = vld [vmem:[%s8295_s2 + $0x10] sm:$0xff]  ;;  %v7388_v23 = vsub.f32 %v865_v17, %v7372_v18 }
  0x1f   :  { %6339 = vmatpush3.msra.mxu1 %v7190_v5  ;;  %6311 = vmatprep.mubr.f32.mxu1 %v7318_v0 }
  0x20   :  { %6340 = vmatprep.subr.mxu1 %v7201_v9  ;;  %6354 = vmatprep.subr.mxu0 %v7233_v22 }
  0x21   :  { %6323 = vmatmul.mubr.f32.vlgmr.msra.gmra.mxu0 %v7239_v24  ;;  %6312 = vmatmul.mubr.f32.gmra.mxu1 %v7320_v1  ;;  %v863_v24 = vld [vmem:[%s8295_s2 + $0x8] sm:$0xff] }
  0x22   :  { %6325 = vmatprep.mubr.f32.mxu0 %v7267_v35  ;;  %6341 = vmatpush3.msra.mxu1 %v7201_v9 }
  0x23   :  { %6342 = vmatprep.mubr.f32.mxu1 %v139_v31  ;;  %6355 = vmatpush3.msra.mxu0 %v7233_v22  ;;  %v7390_v22 = vand.u32 4294901760, %v864_v21  ;;  %v7414_v31 = vand.u32 4294901760, %v863_v24 }
  0x24   :  { %6374 = vmatprep.subr.mxu1 %v7186_v3  ;;  %6356 = vmatprep.subr.mxu0 %v7242_v25 }
  0x25   :  { %6326 = vmatmul.mubr.f32.gmra.mxu0 %v7270_v36  ;;  %6343 = vmatmul.mubr.f32.vlgmr.msra.gmra.mxu1 %v149_v32  ;;  %v862_v32 = vld [vmem:[%s8295_s2] sm:$0xff]  ;;  %v7437_v36 = vsub.f32 %v863_v24, %v7414_v31 }
  0x26   :  { %6328 = vmatprep.mubr.f32.mxu0 %v7312_v62  ;;  %6375 = vmatpush3.msra.mxu1 %v7186_v3  ;;  %v7406_v3 = vand.u32 4294901760, %v7388_v23  ;;  %v7431_v35 = vand.u32 4294901760, %v862_v32 }
  0x27   :  { %6345 = vmatprep.mubr.f32.mxu1 %v159_v45  ;;  %6357 = vmatpush3.msra.mxu0 %v7242_v25  ;;  %v7409_v25 = vsub.f32 %v864_v21, %v7390_v22  ;;  %v7456_v39 = vand.u32 4294901760, %v7437_v36 }
  0x28   :  { %6376 = vmatprep.subr.mxu1 %v7188_v4  ;;  %6358 = vmatprep.subr.mxu0 %v7247_v26  ;;  %v7451_v38 = vsub.f32 %v862_v32, %v7431_v35 }
  0x29   :  { %6329 = vmatmul.mubr.f32.gmra.mxu0 %v7315_v63  ;;  %6346 = vmatmul.mubr.f32.gmra.mxu1 %v169_v46  ;;  %v991_v40 = vsub.f32 %v7437_v36, %v7456_v39 }
  0x2a   :  { %6331 = vmatprep.mubr.f32.mxu0 %v7326_v7  ;;  %6377 = vmatpush3.msra.mxu1 %v7188_v4  ;;  %v977_v4 = vsub.f32 %v7388_v23, %v7406_v3 }
  0x2b   :  { %6348 = vmatprep.mubr.f32.mxu1 %v179_v2  ;;  %6359 = vmatpush3.msra.mxu0 %v7247_v26  ;;  %v7429_v26 = vand.u32 4294901760, %v7409_v25 }
  0x2c   :  { %6360 = vmatprep.subr.mxu0 %v7254_v29  ;;  %6378 = vmatprep.subr.mxu1 %v7190_v5 }
  0x2d   :  { %6332 = vmatmul.mubr.f32.gmra.mxu0 %v7329_v8  ;;  %6349 = vmatmul.mubr.f32.gmra.mxu1 %v189_v6  ;;  %v984_v37 = vsub.f32 %v7409_v25, %v7429_v26 }
  0x2e   :  { %6361 = vmatpush3.msra.mxu0 %v7254_v29  ;;  %6362 = vmatprep.mubr.f32.mxu0 %v7215_v15  ;;  %v7135_v29 = vmov 0.0  }
  0x2f   :  { %6379 = vmatpush3.msra.mxu1 %v7190_v5  ;;  %6351 = vmatprep.mubr.f32.mxu1 %v199_v12  ;;  %v7446_v5 = vand.u32 4294901760, %v977_v4 }
  0x30   :  { %6380 = vmatprep.subr.mxu1 %v7201_v9  ;;  %6394 = vmatprep.subr.mxu0 %v7135_v29 }
  0x31   :  { %6363 = vmatmul.mubr.f32.vlgmr.msra.gmra.mxu0 %v7217_v16  ;;  %6352 = vmatmul.mubr.f32.gmra.mxu1 %v209_v13 }
  0x32   :  { %6365 = vmatprep.mubr.f32.mxu0 %v7249_v27  ;;  %6381 = vmatpush3.msra.mxu1 %v7201_v9  ;;  %v7464_v9 = vand.u32 4294901760, %v984_v37 }
  0x33   :  { %6382 = vmatprep.mubr.f32.mxu1 %v7215_v15  ;;  %6395 = vmatpush3.msra.mxu0 %v7372_v18  ;;  %v7467_v15 = vand.u32 4294901760, %v7451_v38 }
  0x34   :  { %6405 = vmatprep.subr.mxu1 %v7135_v29  ;;  %6396 = vmatprep.subr.mxu0 %v7135_v29 }
  0x35   :  { %6366 = vmatmul.mubr.f32.gmra.mxu0 %v7251_v28  ;;  %6383 = vmatmul.mubr.f32.vlgmr.msra.gmra.mxu1 %v7217_v16  ;;  %v998_v16 = vsub.f32 %v7451_v38, %v7467_v15 }
  0x36   :  { %6368 = vmatprep.mubr.f32.mxu0 %v7305_v55  ;;  %6406 = vmatpush3.msra.mxu1 %v7446_v5 }
  0x37   :  { %6385 = vmatprep.mubr.f32.mxu1 %v7249_v27  ;;  %6397 = vmatpush3.msra.mxu0 %v7390_v22  ;;  %v7483_v27 = vand.u32 4294901760, %v991_v40 }
  0x38   :  { %6407 = vmatprep.subr.mxu1 %v7135_v29  ;;  %6398 = vmatprep.subr.mxu0 %v7135_v29 }
  0x39   :  { %6369 = vmatmul.mubr.f32.gmra.mxu0 %v7307_v56  ;;  %6386 = vmatmul.mubr.f32.gmra.mxu1 %v7251_v28  ;;  %v7492_v28 = vand.u32 4294901760, %v998_v16 }
  0x3a   :  { %6371 = vmatprep.mubr.f32.mxu0 %v7318_v0  ;;  %6408 = vmatpush3.msra.mxu1 %v7464_v9 }
  0x3b   :  { %6399 = vmatpush3.msra.mxu0 %v7414_v31  ;;  %6388 = vmatprep.mubr.f32.mxu1 %v7305_v55 }
  0x3c   :  { %6400 = vmatprep.subr.mxu0 %v7135_v29  ;;  %6409 = vmatprep.subr.mxu1 %v7135_v29 }
  0x3d   :  { %6372 = vmatmul.mubr.f32.gmra.mxu0 %v7320_v1  ;;  %6389 = vmatmul.mubr.f32.gmra.mxu1 %v7307_v56 }
  0x3e   :  { %6401 = vmatpush3.msra.mxu0 %v7431_v35  ;;  %6402 = vmatprep.mubr.msk.f32.mxu0 %vm7136_vm1, %v7135_v29 }
  0x3f   :  { %6410 = vmatpush3.msra.mxu1 %v7483_v27  ;;  %6416 = vmatprep.subr.mxu0 %v7135_v29 }
  0x40   :  { %6391 = vmatprep.mubr.f32.mxu1 %v7318_v0  ;;  %6411 = vmatprep.subr.mxu1 %v7135_v29 }
  0x41   :  { %6403 = vmatmul.mubr.f32.vlgmr.msra.gmra.mxu0 %v7135_v29  ;;  %6392 = vmatmul.mubr.f32.gmra.mxu1 %v7320_v1 }
  0x42   :  { %6417 = vmatpush3.msra.mxu0 %v7388_v23  ;;  %6412 = vmatpush3.msra.mxu1 %v7492_v28 }
  0x43   :  { %6418 = vmatprep.subr.mxu0 %v7135_v29  ;;  %6413 = vmatprep.mubr.msk.f32.mxu1 %vm7136_vm1, %v7135_v29 }
  0x44   :  { %6419 = vmatpush3.msra.mxu0 %v7409_v25  ;;  %6427 = vmatprep.subr.mxu1 %v7135_v29 }
  0x45   :  { %6420 = vmatprep.subr.mxu0 %v7135_v29  ;;  %6414 = vmatmul.mubr.f32.vlgmr.msra.gmra.mxu1 %v7135_v29 }
  0x46   :  { %6421 = vmatpush3.msra.mxu0 %v7437_v36  ;;  %6428 = vmatpush3.msra.mxu1 %v7372_v18 }
  0x47   :  { %6422 = vmatprep.subr.mxu0 %v7135_v29  ;;  %6424 = vmatprep.mubr.msk.f32.mxu0 %vm7136_vm1, %v7135_v29 }
  0x48   :  { %6423 = vmatpush3.msra.mxu0 %v7451_v38  ;;  %6429 = vmatprep.subr.mxu1 %v7135_v29 }
  0x49   :  { %6438 = vmatprep.subr.mxu0 %v7135_v29  ;;  %6425 = vmatmul.mubr.f32.vlgmr.msra.gmra.mxu0 %v7135_v29 }
  0x4a   :  { %6430 = vmatpush3.msra.mxu1 %v7390_v22  ;;  %6439 = vmatpush3.msra.mxu0 %v7406_v3 }
  0x4b   :  { %6431 = vmatprep.subr.mxu1 %v7135_v29  ;;  %6440 = vmatprep.subr.mxu0 %v7135_v29 }
  0x4c   :  { %6432 = vmatpush3.msra.mxu1 %v7414_v31  ;;  %6441 = vmatpush3.msra.mxu0 %v7429_v26 }
  0x4d   :  { %6433 = vmatprep.subr.mxu1 %v7135_v29  ;;  %6442 = vmatprep.subr.mxu0 %v7135_v29 }
  0x4e   :  { %6434 = vmatpush3.msra.mxu1 %v7431_v35  ;;  %6435 = vmatprep.mubr.msk.f32.mxu1 %vm7136_vm1, %v7135_v29 }
  0x4f   :  { %6443 = vmatpush3.msra.mxu0 %v7456_v39  ;;  %6436 = vmatmul.mubr.f32.vlgmr.msra.gmra.mxu1 %v7135_v29 }
  0x50   :  { %6444 = vmatprep.subr.mxu0 %v7135_v29  ;;  %6449 = vmatprep.subr.mxu1 %v7135_v29 }
  0x51   :  { %6445 = vmatpush3.msra.mxu0 %v7467_v15  ;;  %6446 = vmatprep.mubr.msk.f32.mxu0 %vm7136_vm1, %v7135_v29 }
  0x52   :  { %6450 = vmatpush3.msra.mxu1 %v7372_v18  ;;  %6447 = vmatmul.mubr.f32.vlgmr.msra.gmra.mxu0 %v7135_v29 }
  0x53   :  { %6451 = vmatprep.subr.mxu1 %v7135_v29  ;;  %6457 = vmatprep.mubr.msk.f32.mxu1 %vm7136_vm1, %v7135_v29 }
  0x54   :  { %6452 = vmatpush3.msra.mxu1 %v7390_v22  ;;  %6460 = vmatprep.subr.mxu0 %v7135_v29 }
  0x55   :  { %6453 = vmatprep.subr.mxu1 %v7135_v29  ;;  %6461 = vmatpush3.msra.mxu0 %v7372_v18 }
  0x56   :  { %6454 = vmatpush3.msra.mxu1 %v7414_v31  ;;  %6462 = vmatprep.subr.mxu0 %v7135_v29 }
  0x57   :  { %6455 = vmatprep.subr.mxu1 %v7135_v29  ;;  %6463 = vmatpush3.msra.mxu0 %v7390_v22 }
  0x58   :  { %6456 = vmatpush3.msra.mxu1 %v7431_v35  ;;  %6464 = vmatprep.subr.mxu0 %v7135_v29 }
  0x59   :  { %6458 = vmatmul.mubr.f32.vlgmr.msra.gmra.mxu1 %v7135_v29  ;;  %6471 = vmatprep.subr.mxu1 %v7135_v29 }
  0x5a   :  { %6472 = vmatpush3.msra.mxu1 %v7446_v5  ;;  %6479 = vmatprep.mubr.msk.f32.mxu1 %vm7136_vm1, %v7135_v29 }
  0x5b   :  { %6473 = vmatprep.subr.mxu1 %v7135_v29  ;;  %6465 = vmatpush3.msra.mxu0 %v7414_v31 }
  0x5c   :  { %6474 = vmatpush3.msra.mxu1 %v7464_v9  ;;  %6466 = vmatprep.subr.mxu0 %v7135_v29 }
  0x5d   :  { %6475 = vmatprep.subr.mxu1 %v7135_v29  ;;  %6467 = vmatpush3.msra.mxu0 %v7431_v35 }
  0x5e   :  { %6476 = vmatpush3.msra.mxu1 %v7483_v27  ;;  %6468 = vmatprep.mubr.msk.f32.mxu0 %vm7136_vm1, %v7135_v29 }
  0x5f   :  { %6477 = vmatprep.subr.mxu1 %v7135_v29  ;;  %6482 = vmatprep.subr.mxu0 %v7135_v29 }
  0x60   :  { %6478 = vmatpush3.msra.mxu1 %v7492_v28 }
  0x61   :  { %6493 = vmatprep.subr.mxu1 %v7135_v29 }
  0xd0   :  { %v6284_v42 = vpop.f32.mrf.mxu0 }
  0xd1   :  { %v154_v43 = vadd.f32 %v6284_v42, %v7572_v41 }
  0xd2   :  { %v7575_v44 = vpop.f32.mrf.mxu0 }
  0xd4   :  { %v6287_v45 = vpop.f32.mrf.mxu0 }
  0xd5   :  { %v174_v46 = vadd.f32 %v6287_v45, %v7572_v41  ;;  %v6304_v47 = vpop.f32.mrf.mxu1 }
  0xd6   :  { %v163_v48 = vpop.f32.mrf.mxu0  ;;  %v311_v49 = vadd.f32 %v6304_v47, %v154_v43 }
  0xd7   :  { %v164_v50 = vadd.f32 %v7572_v41, %v163_v48  ;;  %v7579_v51 = vpop.f32.mrf.mxu1 }
  0xd9   :  { %v6290_v52 = vpop.f32.mrf.mxu0  ;;  %v6307_v53 = vpop.f32.mrf.mxu1 }
  0xda   :  { %v194_v54 = vadd.f32 %v6290_v52, %v7572_v41  ;;  %v323_v55 = vadd.f32 %v6307_v53, %v174_v46 }
  0xdb   :  { %v183_v56 = vpop.f32.mrf.mxu0  ;;  %v316_v57 = vpop.f32.mrf.mxu1 }
  0xdc   :  { %v184_v58 = vadd.f32 %v7572_v41, %v183_v56  ;;  %v317_v59 = vadd.f32 %v316_v57, %v164_v50 }
  0xdd   :  { %v6293_v60 = vpop.f32.mrf.mxu0  ;;  %v6310_v61 = vpop.f32.mrf.mxu1 }
  0xde   :  { %v214_v62 = vadd.f32 %v6293_v60, %v7572_v41  ;;  %v335_v63 = vadd.f32 %v6310_v61, %v194_v54 }
  0xdf   :  { %v203_v0 = vpop.f32.mrf.mxu0  ;;  %v328_v1 = vpop.f32.mrf.mxu1 }
  0xe0   :  { %v204_v2 = vadd.f32 %v7572_v41, %v203_v0  ;;  %v329_v6 = vadd.f32 %v328_v1, %v184_v58 }
  0xe1   :  { %v6324_v7 = vpop.f32.mrf.mxu0  ;;  %v6313_v8 = vpop.f32.mrf.mxu1 }
  0xe2   :  { %v434_v10 = vadd.f32 %v6324_v7, %v311_v49  ;;  %v347_v11 = vadd.f32 %v6313_v8, %v214_v62 }
  0xe3   :  { %v7585_v12 = vpop.f32.mrf.mxu0  ;;  %v340_v13 = vpop.f32.mrf.mxu1 }
  0xe4   :  { %v341_v14 = vadd.f32 %v340_v13, %v204_v2 }
  0xe5   :  { %v6327_v19 = vpop.f32.mrf.mxu0  ;;  %v6344_v20 = vpop.f32.mrf.mxu1 }
  0xe6   :  { %v448_v30 = vadd.f32 %v6327_v19, %v323_v55  ;;  %v561_v33 = vadd.f32 %v6344_v20, %v434_v10 }
  0xe7   :  { %v440_v34 = vpop.f32.mrf.mxu0  ;;  %v552_v17 = vpop.f32.mrf.mxu1 }
  0xe8   :  { %v441_v21 = vadd.f32 %v440_v34, %v317_v59 }
  0xe9   :  { %v6330_v24 = vpop.f32.mrf.mxu0  ;;  %v6347_v32 = vpop.f32.mrf.mxu1 }
  0xea   :  { %v462_v4 = vadd.f32 %v6330_v24, %v335_v63  ;;  %v577_v37 = vadd.f32 %v6347_v32, %v448_v30 }
  0xeb   :  { %v454_v40 = vpop.f32.mrf.mxu0  ;;  %v568_v16 = vpop.f32.mrf.mxu1 }
  0xec   :  { %v455_v42 = vadd.f32 %v454_v40, %v329_v6  ;;  %v569_v43 = vadd.f32 %v568_v16, %v441_v21 }
  0xed   :  { %v6333_v45 = vpop.f32.mrf.mxu0  ;;  %v6350_v46 = vpop.f32.mrf.mxu1 }
  0xee   :  { %v476_v47 = vadd.f32 %v6333_v45, %v347_v11  ;;  %v593_v48 = vadd.f32 %v6350_v46, %v462_v4  ;;  %v144_v4 = vadd.f32 %v7572_v41, %v7575_v44 }
  0xef   :  { %v468_v49 = vpop.f32.mrf.mxu0  ;;  %v584_v50 = vpop.f32.mrf.mxu1 }
  0xf0   :  { %v469_v52 = vadd.f32 %v468_v49, %v341_v14  ;;  %v585_v53 = vadd.f32 %v584_v50, %v455_v42 }
  0xf1   :  { %v6364_v54 = vpop.f32.mrf.mxu0  ;;  %v6353_v55 = vpop.f32.mrf.mxu1 }
  0xf2   :  { %v698_v56 = vadd.f32 %v6364_v54, %v561_v33  ;;  %v609_v57 = vadd.f32 %v6353_v55, %v476_v47 }
  0xf3   :  { %v691_v58 = vpop.f32.mrf.mxu0  ;;  %v600_v59 = vpop.f32.mrf.mxu1 }
  0xf4   :  { %v601_v60 = vadd.f32 %v600_v59, %v469_v52 }
  0xf5   :  { %v6367_v61 = vpop.f32.mrf.mxu0  ;;  %v6384_v62 = vpop.f32.mrf.mxu1 }
  0xf6   :  { %v710_v63 = vadd.f32 %v6367_v61, %v577_v37  ;;  %v7587_v0 = vadd.f32 %v6384_v62, %v698_v56 }
  0xf7   :  { %v703_v1 = vpop.f32.mrf.mxu0  ;;  %v808_v2 = vpop.f32.mrf.mxu1 }
  0xf8   :  { %v704_v6 = vadd.f32 %v703_v1, %v569_v43  ;;  %v305_v43 = vadd.f32 %v7579_v51, %v144_v4 }
  0xf9   :  { %v6370_v7 = vpop.f32.mrf.mxu0  ;;  %v6387_v8 = vpop.f32.mrf.mxu1 }
  0xfa   :  { %v722_v10 = vadd.f32 %v6370_v7, %v593_v48  ;;  %v7589_v11 = vadd.f32 %v6387_v8, %v710_v63  ;;  %v427_v48 = vadd.f32 %v7585_v12, %v305_v43 }
  0xfb   :  { %v715_v13 = vpop.f32.mrf.mxu0  ;;  %v820_v14 = vpop.f32.mrf.mxu1 }
  0xfc   :  { %v716_v19 = vadd.f32 %v715_v13, %v585_v53  ;;  %v7591_v20 = vadd.f32 %v820_v14, %v704_v6  ;;  %v553_v52 = vadd.f32 %v552_v17, %v427_v48 }
  0xfd   :  { %v6373_v30 = vpop.f32.mrf.mxu0  ;;  %v6390_v33 = vpop.f32.mrf.mxu1 }
  0xfe   :  { %v734_v34 = vadd.f32 %v6373_v30, %v609_v57  ;;  %v7593_v21 = vadd.f32 %v6390_v33, %v722_v10  ;;  %v692_v54 = vadd.f32 %v691_v58, %v553_v52 }
  0xff   :  { %v727_v24 = vpop.f32.mrf.mxu0  ;;  %v832_v32 = vpop.f32.mrf.mxu1 }
 0x100   :  { %v728_v37 = vadd.f32 %v727_v24, %v601_v60  ;;  %v7597_v40 = vadd.f32 %v832_v32, %v716_v19  ;;  %v809_v44 = vadd.f32 %v808_v2, %v692_v54 }
 0x101   :  { %v945_v16 = vpop.f32.mrf.mxu0  ;;  %v6393_v42 = vpop.f32.mrf.mxu1 }
 0x102   :  { %v7600_v45 = vadd.f32 %v6393_v42, %v734_v34  ;;  %v946_v56 = vadd.f32 %v945_v16, %v809_v44 }
 0x103   :  { %v844_v46 = vpop.f32.mrf.mxu1  ;;  %v6404_v47 = vpop.f32.mrf.mxu0 }
 0x104   :  { %v7603_v49 = vadd.f32 %v844_v46, %v728_v37 }
 0x105   :  { %v1036_v50 = vpop.f32.mrf.mxu1 }
 0x106   :  { %v1037_v57 = vadd.f32 %v1036_v50, %v946_v56 }
 0x107   :  { %v6415_v53 = vpop.f32.mrf.mxu1 }
 0x109   :  { %v1116_v41 = vpop.f32.mrf.mxu0 }
 0x10a   :  { %v1117_v51 = vadd.f32 %v1116_v41, %v1037_v57 }
 0x10b   :  { %v6426_v55 = vpop.f32.mrf.mxu0 }
 0x10f   :  { %v1193_v59 = vpop.f32.mrf.mxu1 }
 0x110   :  { %v1194_v62 = vadd.f32 %v1193_v59, %v1117_v51 }
 0x111   :  { %v6437_v60 = vpop.f32.mrf.mxu1 }
 0x112   :  { %v1276_v61 = vpop.f32.mrf.mxu0 }
 0x113   :  { %v1277_v1 = vadd.f32 %v1276_v61, %v1194_v62 }
 0x114   :  { %v6448_v63 = vpop.f32.mrf.mxu0 }
 0x119   :  { %v1351_v6 = vpop.f32.mrf.mxu1 }
 0x11a   :  { %v1352_v12 = vadd.f32 %v1351_v6, %v1277_v1 }
 0x11b   :  { %v6459_v7 = vpop.f32.mrf.mxu1 }
 0x11c   :  { %7049 = vtanh.f32 %v1352_v12  ;;  %v5881_v17 = vmul.f32 -1.442695, %v1352_v12 }
 0x11e   :  { %7051 = vpow2.f32 %v5881_v17 }
 0x129   :  { %v7050_v8 = vpop.eup %7049 }
 0x12a   :  { %1364 = vrot.lane.b32.xlu0 %v7050_v8, %s7137_s3 }
 0x12b   :  { %v7052_v58 = vpop.eup %7051 }
 0x12c   :  { %v1358_v2 = vadd.f32 1.0, %v7052_v58 }
 0x12e   :  { %7053 = vrcp.f32 %v1358_v2 }
 0x13b   :  { %v7054_v10 = vpop.eup %7053 }
 0x13c   :  { %v1362_v19 = vmul.f32 0.0, %v7054_v10 }
 0x19c   :  { %v1365_v13 = vpop.permute.xlu0 %1364 }
 0x19d   :  { %v1367_v14 = vmul.f32 %v7054_v10, %v1365_v13 }
 0x19f   :  { %1369 = vrot.lane.b32.xlu0 %v1367_v14, %s7137_s3 }
 0x211   :  { %v1370_v30 = vpop.permute.xlu0 %1369 }
 0x212   :  { %v7607_v33 = vadd.f32 %v1370_v30, %v1362_v19 }
 0x214   :  { %7055 = vtanh.f32 %v7607_v33 }
 0x221   :  { %v7056_v34 = vpop.eup %7055 }
 0x222   :  { %1375 = vrot.lane.b32.xlu1 %v7056_v34, %s7137_s3 }
 0x294   :  { %v1376_v24 = vpop.permute.xlu1 %1375 }
 0x295   :  { %v1378_v32 = vmul.f32 %v7054_v10, %v1376_v24 }
 0x297   :  { %1380 = vrot.lane.b32.xlu1 %v1378_v32, %s7138_s28 }
 0x309   :  { %v1381_v4 = vpop.permute.xlu1 %1380 }
 0x30a   :  { %1384 = vst.msk [vmem:[#allocation3] sm:$0xff] %vm1383_vm2, %v1381_v4  ;;  %v1390_v37 = vsel %vm43_vm0, %v1381_v4, 0 }
 0x30b   :  { %1387 = vst.msk [vmem:[#allocation3 + $0x38] sm:$0xff] %vm1386_vm3, %v1381_v4  ;;  %v1461_v16 = vand.u32 4294901760, %v1390_v37 }
 0x30d   :  { %v1462_v42 = vsub.f32 %v1390_v37, %v1461_v16  ;;  %6480 = vmatmul.mubr.f32.vlgmr.msra.gmra.mxu1 %v1461_v16 }
 0x30e   :  { %6494 = vmatpush3.msra.mxu1 %v7372_v18  ;;  %6501 = vmatprep.mubr.msk.f32.mxu1 %vm7136_vm1, %v7135_v29 }
 0x30f   :  { %6495 = vmatprep.subr.mxu1 %v7135_v29  ;;  %v1463_v43 = vand.u32 4294901760, %v1462_v42 }
 0x310   :  { %6496 = vmatpush3.msra.mxu1 %v7390_v22 }
 0x311   :  { %6497 = vmatprep.subr.mxu1 %v7135_v29  ;;  %v1464_v46 = vsub.f32 %v1462_v42, %v1463_v43 }
 0x312   :  { %6498 = vmatpush3.msra.mxu1 %v7414_v31 }
 0x313   :  { %6499 = vmatprep.subr.mxu1 %v7135_v29  ;;  %v1465_v47 = vand.u32 4294901760, %v1464_v46 }
 0x314   :  { %6500 = vmatpush3.msra.mxu1 %v7431_v35 }
 0x315   :  { %6502 = vmatmul.mubr.f32.vlgmr.msra.gmra.mxu1 %v1463_v43  ;;  %6515 = vmatprep.subr.mxu1 %v7135_v29 }
 0x316   :  { %6469 = vmatmul.mubr.f32.vlgmr.msra.gmra.mxu0 %v1465_v47  ;;  %6516 = vmatpush3.msra.mxu1 %v7372_v18 }
 0x317   :  { %6483 = vmatpush3.msra.mxu0 %v7388_v23  ;;  %6517 = vmatprep.subr.mxu1 %v7135_v29 }
 0x318   :  { %6484 = vmatprep.subr.mxu0 %v7135_v29  ;;  %6518 = vmatpush3.msra.mxu1 %v7390_v22 }
 0x319   :  { %6485 = vmatpush3.msra.mxu0 %v7409_v25  ;;  %6519 = vmatprep.subr.mxu1 %v7135_v29 }
 0x31a   :  { %6486 = vmatprep.subr.mxu0 %v7135_v29  ;;  %6520 = vmatpush3.msra.mxu1 %v7414_v31 }
 0x31b   :  { %6487 = vmatpush3.msra.mxu0 %v7437_v36  ;;  %6521 = vmatprep.subr.mxu1 %v7135_v29 }
 0x31c   :  { %6488 = vmatprep.subr.mxu0 %v7135_v29  ;;  %6490 = vmatprep.mubr.msk.f32.mxu0 %vm7136_vm1, %v7135_v29 }
 0x31d   :  { %6489 = vmatpush3.msra.mxu0 %v7451_v38  ;;  %6522 = vmatpush3.msra.mxu1 %v7431_v35 }
 0x31e   :  { %6523 = vmatprep.mubr.msk.f32.mxu1 %vm7136_vm1, %v7135_v29  ;;  %6491 = vmatmul.mubr.f32.vlgmr.msra.gmra.mxu0 %v1462_v42 }
 0x31f   :  { %6504 = vmatprep.subr.mxu0 %v7135_v29  ;;  %6524 = vmatmul.mubr.f32.vlgmr.msra.gmra.mxu1 %v1461_v16 }
 0x320   :  { %6505 = vmatpush3.msra.mxu0 %v7406_v3  ;;  %6512 = vmatprep.mubr.msk.f32.mxu0 %vm7136_vm1, %v7135_v29 }
 0x321   :  { %6506 = vmatprep.subr.mxu0 %v7135_v29  ;;  %6537 = vmatprep.subr.mxu1 %v7135_v29 }
 0x322   :  { %6507 = vmatpush3.msra.mxu0 %v7429_v26  ;;  %6538 = vmatpush3.msra.mxu1 %v7446_v5 }
 0x323   :  { %6508 = vmatprep.subr.mxu0 %v7135_v29  ;;  %6539 = vmatprep.subr.mxu1 %v7135_v29 }
 0x324   :  { %6509 = vmatpush3.msra.mxu0 %v7456_v39  ;;  %6540 = vmatpush3.msra.mxu1 %v7464_v9 }
 0x325   :  { %6510 = vmatprep.subr.mxu0 %v7135_v29  ;;  %6541 = vmatprep.subr.mxu1 %v7135_v29 }
 0x326   :  { %6511 = vmatpush3.msra.mxu0 %v7467_v15  ;;  %6542 = vmatpush3.msra.mxu1 %v7483_v27 }
 0x327   :  { %6513 = vmatmul.mubr.f32.vlgmr.msra.gmra.mxu0 %v1461_v16  ;;  %6543 = vmatprep.subr.mxu1 %v7135_v29 }
 0x328   :  { %6544 = vmatpush3.msra.mxu1 %v7492_v28  ;;  %6526 = vmatprep.subr.mxu0 %v7135_v29 }
 0x329   :  { %6545 = vmatprep.mubr.msk.f32.mxu1 %vm7136_vm1, %v7135_v29  ;;  %6559 = vmatprep.subr.mxu1 %v7135_v29 }
 0x32a   :  { %6527 = vmatpush3.msra.mxu0 %v7372_v18  ;;  %6534 = vmatprep.mubr.msk.f32.mxu0 %vm7136_vm1, %v7135_v29 }
 0x32b   :  { %6528 = vmatprep.subr.mxu0 %v7135_v29 }
 0x32c   :  { %6529 = vmatpush3.msra.mxu0 %v7390_v22 }
 0x32d   :  { %6530 = vmatprep.subr.mxu0 %v7135_v29 }
 0x32e   :  { %6531 = vmatpush3.msra.mxu0 %v7414_v31 }
 0x32f   :  { %6532 = vmatprep.subr.mxu0 %v7135_v29 }
 0x330   :  { %6533 = vmatpush3.msra.mxu0 %v7431_v35 }
 0x331   :  { %6548 = vmatprep.subr.mxu0 %v7135_v29 }
 0x3cd   :  { %v1558_v48 = vpop.f32.mrf.mxu1 }
 0x3cf   :  { %v6481_v50 = vpop.f32.mrf.mxu1 }
 0x3d5   :  { %v1715_v52 = vpop.f32.mrf.mxu1 }
 0x3d6   :  { %v1467_v53 = vpop.f32.mrf.mxu0 }
 0x3d7   :  { %v6503_v54 = vpop.f32.mrf.mxu1  ;;  %v1468_v44 = vadd.f32 %v1467_v53, %v7587_v0 }
 0x3d8   :  { %v6470_v41 = vpop.f32.mrf.mxu0 }
 0x3d9   :  { %v1559_v57 = vadd.f32 %v1558_v48, %v1468_v44 }
 0x3de   :  { %v1638_v55 = vpop.f32.mrf.mxu0 }
 0x3df   :  { %v1873_v56 = vpop.f32.mrf.mxu1  ;;  %v1639_v51 = vadd.f32 %v1638_v55, %v1559_v57 }
 0x3e0   :  { %v6492_v59 = vpop.f32.mrf.mxu0 }
 0x3e1   :  { %v6525_v60 = vpop.f32.mrf.mxu1  ;;  %v1716_v61 = vadd.f32 %v1715_v52, %v1639_v51 }
 0x3e7   :  { %v1798_v62 = vpop.f32.mrf.mxu0 }
 0x3e8   :  { %v1799_v63 = vadd.f32 %v1798_v62, %v1716_v61 }
 0x3e9   :  { %v6514_v1 = vpop.f32.mrf.mxu0 }
 0x3ea   :  { %v1874_v6 = vadd.f32 %v1873_v56, %v1799_v63 }
 0x3ec   :  { %7057 = vtanh.f32 %v1874_v6  ;;  %v5882_v7 = vmul.f32 -1.442695, %v1874_v6 }
 0x3ee   :  { %7059 = vpow2.f32 %v5882_v7 }
 0x3f9   :  { %v7058_v12 = vpop.eup %7057 }
 0x3fa   :  { %1886 = vrot.lane.b32.xlu0 %v7058_v12, %s7137_s3 }
 0x3fb   :  { %v7060_v8 = vpop.eup %7059 }
 0x3fc   :  { %v1880_v17 = vadd.f32 1.0, %v7060_v8 }
 0x3fe   :  { %7061 = vrcp.f32 %v1880_v17 }
 0x40b   :  { %v7062_v0 = vpop.eup %7061 }
 0x40c   :  { %v1884_v10 = vmul.f32 %v7062_v0, %v7607_v33 }
 0x46c   :  { %v1887_v58 = vpop.permute.xlu0 %1886 }
 0x46d   :  { %v1889_v2 = vmul.f32 %v7062_v0, %v1887_v58 }
 0x46f   :  { %1891 = vrot.lane.b32.xlu1 %v1889_v2, %s7137_s3 }
 0x4e1   :  { %v1892_v13 = vpop.permute.xlu1 %1891 }
 0x4e2   :  { %v7679_v14 = vadd.f32 %v1892_v13, %v1884_v10 }
 0x4e4   :  { %7063 = vtanh.f32 %v7679_v14 }
 0x4f1   :  { %v7064_v19 = vpop.eup %7063 }
 0x4f2   :  { %1897 = vrot.lane.b32.xlu0 %v7064_v19, %s7137_s3 }
 0x564   :  { %v1898_v30 = vpop.permute.xlu0 %1897 }
 0x565   :  { %v1900_v34 = vmul.f32 %v7062_v0, %v1898_v30 }
 0x567   :  { %1902 = vrot.lane.b32.xlu1 %v1900_v34, %s7138_s28 }
 0x5d9   :  { %v1903_v24 = vpop.permute.xlu1 %1902 }
 0x5da   :  { %1906 = vst.msk [vmem:[#allocation3 + $0x8] sm:$0xff] %vm1383_vm2, %v1903_v24  ;;  %v1911_v32 = vsel %vm43_vm0, %v1903_v24, 0 }
 0x5db   :  { %1908 = vst.msk [vmem:[#allocation3 + $0x30] sm:$0xff] %vm1386_vm3, %v1903_v24  ;;  %v1982_v33 = vand.u32 4294901760, %v1911_v32 }
 0x5dd   :  { %v1983_v4 = vsub.f32 %v1911_v32, %v1982_v33  ;;  %6546 = vmatmul.mubr.f32.vlgmr.msra.gmra.mxu1 %v1982_v33 }
 0x5de   :  { %6560 = vmatpush3.msra.mxu1 %v7372_v18  ;;  %6567 = vmatprep.mubr.msk.f32.mxu1 %vm7136_vm1, %v7135_v29 }
 0x5df   :  { %6561 = vmatprep.subr.mxu1 %v7135_v29  ;;  %v1984_v37 = vand.u32 4294901760, %v1983_v4 }
 0x5e0   :  { %6562 = vmatpush3.msra.mxu1 %v7390_v22 }
 0x5e1   :  { %6563 = vmatprep.subr.mxu1 %v7135_v29  ;;  %v1985_v16 = vsub.f32 %v1983_v4, %v1984_v37 }
 0x5e2   :  { %6564 = vmatpush3.msra.mxu1 %v7414_v31 }
 0x5e3   :  { %6565 = vmatprep.subr.mxu1 %v7135_v29  ;;  %v1986_v42 = vand.u32 4294901760, %v1985_v16 }
 0x5e4   :  { %6566 = vmatpush3.msra.mxu1 %v7431_v35 }
 0x5e5   :  { %6568 = vmatmul.mubr.f32.vlgmr.msra.gmra.mxu1 %v1984_v37  ;;  %6581 = vmatprep.subr.mxu1 %v7135_v29 }
 0x5e6   :  { %6535 = vmatmul.mubr.f32.vlgmr.msra.gmra.mxu0 %v1986_v42  ;;  %6582 = vmatpush3.msra.mxu1 %v7372_v18 }
 0x5e7   :  { %6549 = vmatpush3.msra.mxu0 %v7388_v23  ;;  %6583 = vmatprep.subr.mxu1 %v7135_v29 }
 0x5e8   :  { %6550 = vmatprep.subr.mxu0 %v7135_v29  ;;  %6584 = vmatpush3.msra.mxu1 %v7390_v22 }
 0x5e9   :  { %6551 = vmatpush3.msra.mxu0 %v7409_v25  ;;  %6585 = vmatprep.subr.mxu1 %v7135_v29 }
 0x5ea   :  { %6552 = vmatprep.subr.mxu0 %v7135_v29  ;;  %6586 = vmatpush3.msra.mxu1 %v7414_v31 }
 0x5eb   :  { %6553 = vmatpush3.msra.mxu0 %v7437_v36  ;;  %6587 = vmatprep.subr.mxu1 %v7135_v29 }
 0x5ec   :  { %6554 = vmatprep.subr.mxu0 %v7135_v29  ;;  %6556 = vmatprep.mubr.msk.f32.mxu0 %vm7136_vm1, %v7135_v29 }
 0x5ed   :  { %6555 = vmatpush3.msra.mxu0 %v7451_v38  ;;  %6588 = vmatpush3.msra.mxu1 %v7431_v35 }
 0x5ee   :  { %6589 = vmatprep.mubr.msk.f32.mxu1 %vm7136_vm1, %v7135_v29  ;;  %6557 = vmatmul.mubr.f32.vlgmr.msra.gmra.mxu0 %v1983_v4 }
 0x5ef   :  { %6570 = vmatprep.subr.mxu0 %v7135_v29  ;;  %6590 = vmatmul.mubr.f32.vlgmr.msra.gmra.mxu1 %v1982_v33 }
 0x5f0   :  { %6571 = vmatpush3.msra.mxu0 %v7406_v3  ;;  %6578 = vmatprep.mubr.msk.f32.mxu0 %vm7136_vm1, %v7135_v29 }
 0x5f1   :  { %6572 = vmatprep.subr.mxu0 %v7135_v29  ;;  %6603 = vmatprep.subr.mxu1 %v7135_v29 }
 0x5f2   :  { %6573 = vmatpush3.msra.mxu0 %v7429_v26  ;;  %6604 = vmatpush3.msra.mxu1 %v7446_v5 }
 0x5f3   :  { %6574 = vmatprep.subr.mxu0 %v7135_v29  ;;  %6605 = vmatprep.subr.mxu1 %v7135_v29 }
 0x5f4   :  { %6575 = vmatpush3.msra.mxu0 %v7456_v39  ;;  %6606 = vmatpush3.msra.mxu1 %v7464_v9 }
 0x5f5   :  { %6576 = vmatprep.subr.mxu0 %v7135_v29  ;;  %6607 = vmatprep.subr.mxu1 %v7135_v29 }
 0x5f6   :  { %6577 = vmatpush3.msra.mxu0 %v7467_v15  ;;  %6608 = vmatpush3.msra.mxu1 %v7483_v27 }
 0x5f7   :  { %6579 = vmatmul.mubr.f32.vlgmr.msra.gmra.mxu0 %v1982_v33  ;;  %6609 = vmatprep.subr.mxu1 %v7135_v29 }
 0x5f8   :  { %6610 = vmatpush3.msra.mxu1 %v7492_v28  ;;  %6592 = vmatprep.subr.mxu0 %v7135_v29 }
 0x5f9   :  { %6611 = vmatprep.mubr.msk.f32.mxu1 %vm7136_vm1, %v7135_v29  ;;  %6625 = vmatprep.subr.mxu1 %v7135_v29 }
 0x5fa   :  { %6593 = vmatpush3.msra.mxu0 %v7372_v18  ;;  %6600 = vmatprep.mubr.msk.f32.mxu0 %vm7136_vm1, %v7135_v29 }
 0x5fb   :  { %6594 = vmatprep.subr.mxu0 %v7135_v29 }
 0x5fc   :  { %6595 = vmatpush3.msra.mxu0 %v7390_v22 }
 0x5fd   :  { %6596 = vmatprep.subr.mxu0 %v7135_v29 }
 0x5fe   :  { %6597 = vmatpush3.msra.mxu0 %v7414_v31 }
 0x5ff   :  { %6598 = vmatprep.subr.mxu0 %v7135_v29 }
 0x600   :  { %6599 = vmatpush3.msra.mxu0 %v7431_v35 }
 0x601   :  { %6614 = vmatprep.subr.mxu0 %v7135_v29 }
 0x69d   :  { %v2079_v43 = vpop.f32.mrf.mxu1 }
 0x69f   :  { %v6547_v46 = vpop.f32.mrf.mxu1 }
 0x6a5   :  { %v2236_v47 = vpop.f32.mrf.mxu1 }
 0x6a6   :  { %v1988_v48 = vpop.f32.mrf.mxu0 }
 0x6a7   :  { %v6569_v50 = vpop.f32.mrf.mxu1  ;;  %v1989_v53 = vadd.f32 %v1988_v48, %v7591_v20 }
 0x6a8   :  { %v6536_v52 = vpop.f32.mrf.mxu0 }
 0x6a9   :  { %v2080_v44 = vadd.f32 %v2079_v43, %v1989_v53 }
 0x6ae   :  { %v2159_v54 = vpop.f32.mrf.mxu0 }
 0x6af   :  { %v2394_v41 = vpop.f32.mrf.mxu1  ;;  %v2160_v57 = vadd.f32 %v2159_v54, %v2080_v44 }
 0x6b0   :  { %v6558_v55 = vpop.f32.mrf.mxu0 }
 0x6b1   :  { %v6591_v56 = vpop.f32.mrf.mxu1  ;;  %v2237_v59 = vadd.f32 %v2236_v47, %v2160_v57 }
 0x6b7   :  { %v2319_v60 = vpop.f32.mrf.mxu0 }
 0x6b8   :  { %v2320_v51 = vadd.f32 %v2319_v60, %v2237_v59 }
 0x6b9   :  { %v6580_v61 = vpop.f32.mrf.mxu0 }
 0x6ba   :  { %v2395_v62 = vadd.f32 %v2394_v41, %v2320_v51 }
 0x6bc   :  { %7065 = vtanh.f32 %v2395_v62  ;;  %v5883_v1 = vmul.f32 -1.442695, %v2395_v62 }
 0x6be   :  { %7067 = vpow2.f32 %v5883_v1 }
 0x6c9   :  { %v7066_v63 = vpop.eup %7065 }
 0x6ca   :  { %2407 = vrot.lane.b32.xlu0 %v7066_v63, %s7137_s3 }
 0x6cb   :  { %v7068_v6 = vpop.eup %7067 }
 0x6cc   :  { %v2401_v12 = vadd.f32 1.0, %v7068_v6 }
 0x6ce   :  { %7069 = vrcp.f32 %v2401_v12 }
 0x6db   :  { %v7070_v20 = vpop.eup %7069 }
 0x6dc   :  { %v2405_v17 = vmul.f32 %v7070_v20, %v7679_v14 }
 0x73c   :  { %v2408_v7 = vpop.permute.xlu0 %2407 }
 0x73d   :  { %v2410_v8 = vmul.f32 %v7070_v20, %v2408_v7 }
 0x73f   :  { %2412 = vrot.lane.b32.xlu1 %v2410_v8, %s7137_s3 }
 0x7b1   :  { %v2413_v0 = vpop.permute.xlu1 %2412 }
 0x7b2   :  { %v7751_v58 = vadd.f32 %v2413_v0, %v2405_v17 }
 0x7b4   :  { %7071 = vtanh.f32 %v7751_v58 }
 0x7c1   :  { %v7072_v2 = vpop.eup %7071 }
 0x7c2   :  { %2418 = vrot.lane.b32.xlu0 %v7072_v2, %s7137_s3 }
 0x834   :  { %v2419_v10 = vpop.permute.xlu0 %2418 }
 0x835   :  { %v2421_v13 = vmul.f32 %v7070_v20, %v2419_v10 }
 0x837   :  { %2423 = vrot.lane.b32.xlu1 %v2421_v13, %s7138_s28 }
 0x8a9   :  { %v2424_v19 = vpop.permute.xlu1 %2423 }
 0x8aa   :  { %2427 = vst.msk [vmem:[#allocation3 + $0x10] sm:$0xff] %vm1383_vm2, %v2424_v19  ;;  %v2432_v30 = vsel %vm43_vm0, %v2424_v19, 0 }
 0x8ab   :  { %2429 = vst.msk [vmem:[#allocation3 + $0x28] sm:$0xff] %vm1386_vm3, %v2424_v19  ;;  %v2503_v14 = vand.u32 4294901760, %v2432_v30 }
 0x8ad   :  { %v2504_v34 = vsub.f32 %v2432_v30, %v2503_v14  ;;  %6612 = vmatmul.mubr.f32.vlgmr.msra.gmra.mxu1 %v2503_v14 }
 0x8ae   :  { %6626 = vmatpush3.msra.mxu1 %v7372_v18  ;;  %6633 = vmatprep.mubr.msk.f32.mxu1 %vm7136_vm1, %v7135_v29 }
 0x8af   :  { %6627 = vmatprep.subr.mxu1 %v7135_v29  ;;  %v2505_v24 = vand.u32 4294901760, %v2504_v34 }
 0x8b0   :  { %6628 = vmatpush3.msra.mxu1 %v7390_v22 }
 0x8b1   :  { %6629 = vmatprep.subr.mxu1 %v7135_v29  ;;  %v2506_v32 = vsub.f32 %v2504_v34, %v2505_v24 }
 0x8b2   :  { %6630 = vmatpush3.msra.mxu1 %v7414_v31 }
 0x8b3   :  { %6631 = vmatprep.subr.mxu1 %v7135_v29  ;;  %v2507_v33 = vand.u32 4294901760, %v2506_v32 }
 0x8b4   :  { %6632 = vmatpush3.msra.mxu1 %v7431_v35 }
 0x8b5   :  { %6634 = vmatmul.mubr.f32.vlgmr.msra.gmra.mxu1 %v2505_v24  ;;  %6647 = vmatprep.subr.mxu1 %v7135_v29 }
 0x8b6   :  { %6601 = vmatmul.mubr.f32.vlgmr.msra.gmra.mxu0 %v2507_v33  ;;  %6648 = vmatpush3.msra.mxu1 %v7372_v18 }
 0x8b7   :  { %6615 = vmatpush3.msra.mxu0 %v7388_v23  ;;  %6649 = vmatprep.subr.mxu1 %v7135_v29 }
 0x8b8   :  { %6616 = vmatprep.subr.mxu0 %v7135_v29  ;;  %6650 = vmatpush3.msra.mxu1 %v7390_v22 }
 0x8b9   :  { %6617 = vmatpush3.msra.mxu0 %v7409_v25  ;;  %6651 = vmatprep.subr.mxu1 %v7135_v29 }
 0x8ba   :  { %6618 = vmatprep.subr.mxu0 %v7135_v29  ;;  %6652 = vmatpush3.msra.mxu1 %v7414_v31 }
 0x8bb   :  { %6619 = vmatpush3.msra.mxu0 %v7437_v36  ;;  %6653 = vmatprep.subr.mxu1 %v7135_v29 }
 0x8bc   :  { %6620 = vmatprep.subr.mxu0 %v7135_v29  ;;  %6622 = vmatprep.mubr.msk.f32.mxu0 %vm7136_vm1, %v7135_v29 }
 0x8bd   :  { %6621 = vmatpush3.msra.mxu0 %v7451_v38  ;;  %6654 = vmatpush3.msra.mxu1 %v7431_v35 }
 0x8be   :  { %6655 = vmatprep.mubr.msk.f32.mxu1 %vm7136_vm1, %v7135_v29  ;;  %6623 = vmatmul.mubr.f32.vlgmr.msra.gmra.mxu0 %v2504_v34 }
 0x8bf   :  { %6636 = vmatprep.subr.mxu0 %v7135_v29  ;;  %6656 = vmatmul.mubr.f32.vlgmr.msra.gmra.mxu1 %v2503_v14 }
 0x8c0   :  { %6637 = vmatpush3.msra.mxu0 %v7406_v3  ;;  %6644 = vmatprep.mubr.msk.f32.mxu0 %vm7136_vm1, %v7135_v29 }
 0x8c1   :  { %6638 = vmatprep.subr.mxu0 %v7135_v29  ;;  %6669 = vmatprep.subr.mxu1 %v7135_v29 }
 0x8c2   :  { %6639 = vmatpush3.msra.mxu0 %v7429_v26  ;;  %6670 = vmatpush3.msra.mxu1 %v7446_v5 }
 0x8c3   :  { %6640 = vmatprep.subr.mxu0 %v7135_v29  ;;  %6671 = vmatprep.subr.mxu1 %v7135_v29 }
 0x8c4   :  { %6641 = vmatpush3.msra.mxu0 %v7456_v39  ;;  %6672 = vmatpush3.msra.mxu1 %v7464_v9 }
 0x8c5   :  { %6642 = vmatprep.subr.mxu0 %v7135_v29  ;;  %6673 = vmatprep.subr.mxu1 %v7135_v29 }
 0x8c6   :  { %6643 = vmatpush3.msra.mxu0 %v7467_v15  ;;  %6674 = vmatpush3.msra.mxu1 %v7483_v27 }
 0x8c7   :  { %6645 = vmatmul.mubr.f32.vlgmr.msra.gmra.mxu0 %v2503_v14  ;;  %6675 = vmatprep.subr.mxu1 %v7135_v29 }
 0x8c8   :  { %6676 = vmatpush3.msra.mxu1 %v7492_v28  ;;  %6658 = vmatprep.subr.mxu0 %v7135_v29 }
 0x8c9   :  { %6677 = vmatprep.mubr.msk.f32.mxu1 %vm7136_vm1, %v7135_v29  ;;  %6691 = vmatprep.subr.mxu1 %v7135_v29 }
 0x8ca   :  { %6659 = vmatpush3.msra.mxu0 %v7372_v18  ;;  %6666 = vmatprep.mubr.msk.f32.mxu0 %vm7136_vm1, %v7135_v29 }
 0x8cb   :  { %6660 = vmatprep.subr.mxu0 %v7135_v29 }
 0x8cc   :  { %6661 = vmatpush3.msra.mxu0 %v7390_v22 }
 0x8cd   :  { %6662 = vmatprep.subr.mxu0 %v7135_v29 }
 0x8ce   :  { %6663 = vmatpush3.msra.mxu0 %v7414_v31 }
 0x8cf   :  { %6664 = vmatprep.subr.mxu0 %v7135_v29 }
 0x8d0   :  { %6665 = vmatpush3.msra.mxu0 %v7431_v35 }
 0x8d1   :  { %6680 = vmatprep.subr.mxu0 %v7135_v29 }
 0x96d   :  { %v2600_v4 = vpop.f32.mrf.mxu1 }
 0x96f   :  { %v6613_v37 = vpop.f32.mrf.mxu1 }
 0x975   :  { %v2757_v16 = vpop.f32.mrf.mxu1 }
 0x976   :  { %v2509_v42 = vpop.f32.mrf.mxu0 }
 0x977   :  { %v6635_v43 = vpop.f32.mrf.mxu1  ;;  %v2510_v47 = vadd.f32 %v2509_v42, %v7589_v11 }
 0x978   :  { %v6602_v46 = vpop.f32.mrf.mxu0 }
 0x979   :  { %v2601_v52 = vadd.f32 %v2600_v4, %v2510_v47 }
 0x97e   :  { %v2680_v48 = vpop.f32.mrf.mxu0 }
 0x97f   :  { %v2915_v50 = vpop.f32.mrf.mxu1  ;;  %v2681_v41 = vadd.f32 %v2680_v48, %v2601_v52 }
 0x980   :  { %v6624_v53 = vpop.f32.mrf.mxu0 }
 0x981   :  { %v6657_v54 = vpop.f32.mrf.mxu1  ;;  %v2758_v44 = vadd.f32 %v2757_v16, %v2681_v41 }
 0x987   :  { %v2840_v55 = vpop.f32.mrf.mxu0 }
 0x988   :  { %v2841_v56 = vadd.f32 %v2840_v55, %v2758_v44 }
 0x989   :  { %v6646_v57 = vpop.f32.mrf.mxu0 }
 0x98a   :  { %v2916_v59 = vadd.f32 %v2915_v50, %v2841_v56 }
 0x98c   :  { %7073 = vtanh.f32 %v2916_v59  ;;  %v5884_v51 = vmul.f32 -1.442695, %v2916_v59 }
 0x98e   :  { %7075 = vpow2.f32 %v5884_v51 }
 0x999   :  { %v7074_v60 = vpop.eup %7073 }
 0x99a   :  { %2928 = vrot.lane.b32.xlu0 %v7074_v60, %s7137_s3 }
 0x99b   :  { %v7076_v61 = vpop.eup %7075 }
 0x99c   :  { %v2922_v62 = vadd.f32 1.0, %v7076_v61 }
 0x99e   :  { %7077 = vrcp.f32 %v2922_v62 }
 0x9ab   :  { %v7078_v11 = vpop.eup %7077 }
 0x9ac   :  { %v2926_v6 = vmul.f32 %v7078_v11, %v7751_v58 }
 0xa0c   :  { %v2929_v63 = vpop.permute.xlu0 %2928 }
 0xa0d   :  { %v2931_v1 = vmul.f32 %v7078_v11, %v2929_v63 }
 0xa0f   :  { %2933 = vrot.lane.b32.xlu1 %v2931_v1, %s7137_s3 }
 0xa81   :  { %v2934_v12 = vpop.permute.xlu1 %2933 }
 0xa82   :  { %v7823_v20 = vadd.f32 %v2934_v12, %v2926_v6 }
 0xa84   :  { %7079 = vtanh.f32 %v7823_v20 }
 0xa91   :  { %v7080_v7 = vpop.eup %7079 }
 0xa92   :  { %2939 = vrot.lane.b32.xlu0 %v7080_v7, %s7137_s3 }
 0xb04   :  { %v2940_v8 = vpop.permute.xlu0 %2939 }
 0xb05   :  { %v2942_v17 = vmul.f32 %v7078_v11, %v2940_v8 }
 0xb07   :  { %2944 = vrot.lane.b32.xlu1 %v2942_v17, %s7138_s28 }
 0xb79   :  { %v2945_v0 = vpop.permute.xlu1 %2944 }
 0xb7a   :  { %2948 = vst.msk [vmem:[#allocation3 + $0x18] sm:$0xff] %vm1383_vm2, %v2945_v0  ;;  %v2953_v2 = vsel %vm43_vm0, %v2945_v0, 0 }
 0xb7b   :  { %2950 = vst.msk [vmem:[#allocation3 + $0x20] sm:$0xff] %vm1386_vm3, %v2945_v0  ;;  %v3024_v58 = vand.u32 4294901760, %v2953_v2 }
 0xb7d   :  { %v3025_v10 = vsub.f32 %v2953_v2, %v3024_v58  ;;  %6678 = vmatmul.mubr.f32.vlgmr.msra.gmra.mxu1 %v3024_v58 }
 0xb7e   :  { %6692 = vmatpush3.msra.mxu1 %v7372_v18  ;;  %6699 = vmatprep.mubr.msk.f32.mxu1 %vm7136_vm1, %v7135_v29 }
 0xb7f   :  { %6693 = vmatprep.subr.mxu1 %v7135_v29  ;;  %v3026_v13 = vand.u32 4294901760, %v3025_v10 }
 0xb80   :  { %6694 = vmatpush3.msra.mxu1 %v7390_v22 }
 0xb81   :  { %6695 = vmatprep.subr.mxu1 %v7135_v29  ;;  %v3027_v19 = vsub.f32 %v3025_v10, %v3026_v13 }
 0xb82   :  { %6696 = vmatpush3.msra.mxu1 %v7414_v31 }
 0xb83   :  { %6697 = vmatprep.subr.mxu1 %v7135_v29  ;;  %v3028_v30 = vand.u32 4294901760, %v3027_v19 }
 0xb84   :  { %6698 = vmatpush3.msra.mxu1 %v7431_v35 }
 0xb85   :  { %6700 = vmatmul.mubr.f32.vlgmr.msra.gmra.mxu1 %v3026_v13  ;;  %6713 = vmatprep.subr.mxu1 %v7135_v29 }
 0xb86   :  { %6667 = vmatmul.mubr.f32.vlgmr.msra.gmra.mxu0 %v3028_v30  ;;  %6714 = vmatpush3.msra.mxu1 %v7372_v18 }
 0xb87   :  { %6681 = vmatpush3.msra.mxu0 %v7388_v23  ;;  %6715 = vmatprep.subr.mxu1 %v7135_v29 }
 0xb88   :  { %6682 = vmatprep.subr.mxu0 %v7135_v29  ;;  %6716 = vmatpush3.msra.mxu1 %v7390_v22 }
 0xb89   :  { %6683 = vmatpush3.msra.mxu0 %v7409_v25  ;;  %6717 = vmatprep.subr.mxu1 %v7135_v29 }
 0xb8a   :  { %6684 = vmatprep.subr.mxu0 %v7135_v29  ;;  %6718 = vmatpush3.msra.mxu1 %v7414_v31 }
 0xb8b   :  { %6685 = vmatpush3.msra.mxu0 %v7437_v36  ;;  %6719 = vmatprep.subr.mxu1 %v7135_v29 }
 0xb8c   :  { %6686 = vmatprep.subr.mxu0 %v7135_v29  ;;  %6688 = vmatprep.mubr.msk.f32.mxu0 %vm7136_vm1, %v7135_v29 }
 0xb8d   :  { %6687 = vmatpush3.msra.mxu0 %v7451_v38  ;;  %6720 = vmatpush3.msra.mxu1 %v7431_v35 }
 0xb8e   :  { %6721 = vmatprep.mubr.msk.f32.mxu1 %vm7136_vm1, %v7135_v29  ;;  %6689 = vmatmul.mubr.f32.vlgmr.msra.gmra.mxu0 %v3025_v10 }
 0xb8f   :  { %6702 = vmatprep.subr.mxu0 %v7135_v29  ;;  %6722 = vmatmul.mubr.f32.vlgmr.msra.gmra.mxu1 %v3024_v58 }
 0xb90   :  { %6703 = vmatpush3.msra.mxu0 %v7406_v3  ;;  %6710 = vmatprep.mubr.msk.f32.mxu0 %vm7136_vm1, %v7135_v29 }
 0xb91   :  { %6704 = vmatprep.subr.mxu0 %v7135_v29  ;;  %6735 = vmatprep.subr.mxu1 %v7135_v29 }
 0xb92   :  { %6705 = vmatpush3.msra.mxu0 %v7429_v26  ;;  %6736 = vmatpush3.msra.mxu1 %v7446_v5 }
 0xb93   :  { %6706 = vmatprep.subr.mxu0 %v7135_v29  ;;  %6737 = vmatprep.subr.mxu1 %v7135_v29 }
 0xb94   :  { %6707 = vmatpush3.msra.mxu0 %v7456_v39  ;;  %6738 = vmatpush3.msra.mxu1 %v7464_v9 }
 0xb95   :  { %6708 = vmatprep.subr.mxu0 %v7135_v29  ;;  %6739 = vmatprep.subr.mxu1 %v7135_v29 }
 0xb96   :  { %6709 = vmatpush3.msra.mxu0 %v7467_v15  ;;  %6740 = vmatpush3.msra.mxu1 %v7483_v27 }
 0xb97   :  { %6711 = vmatmul.mubr.f32.vlgmr.msra.gmra.mxu0 %v3024_v58  ;;  %6741 = vmatprep.subr.mxu1 %v7135_v29 }
 0xb98   :  { %6742 = vmatpush3.msra.mxu1 %v7492_v28  ;;  %6724 = vmatprep.subr.mxu0 %v7135_v29 }
 0xb99   :  { %6743 = vmatprep.mubr.msk.f32.mxu1 %vm7136_vm1, %v7135_v29  ;;  %6757 = vmatprep.subr.mxu1 %v7135_v29 }
 0xb9a   :  { %6725 = vmatpush3.msra.mxu0 %v7372_v18  ;;  %6732 = vmatprep.mubr.msk.f32.mxu0 %vm7136_vm1, %v7135_v29 }
 0xb9b   :  { %6726 = vmatprep.subr.mxu0 %v7135_v29 }
 0xb9c   :  { %6727 = vmatpush3.msra.mxu0 %v7390_v22 }
 0xb9d   :  { %6728 = vmatprep.subr.mxu0 %v7135_v29 }
 0xb9e   :  { %6729 = vmatpush3.msra.mxu0 %v7414_v31 }
 0xb9f   :  { %6730 = vmatprep.subr.mxu0 %v7135_v29 }
 0xba0   :  { %6731 = vmatpush3.msra.mxu0 %v7431_v35 }
 0xba1   :  { %6746 = vmatprep.subr.mxu0 %v7135_v29 }
 0xc3d   :  { %v3121_v14 = vpop.f32.mrf.mxu1 }
 0xc3f   :  { %v6679_v34 = vpop.f32.mrf.mxu1 }
 0xc45   :  { %v3278_v24 = vpop.f32.mrf.mxu1 }
 0xc46   :  { %v3030_v32 = vpop.f32.mrf.mxu0 }
 0xc47   :  { %v6701_v33 = vpop.f32.mrf.mxu1  ;;  %v3031_v37 = vadd.f32 %v3030_v32, %v7597_v40 }
 0xc48   :  { %v6668_v4 = vpop.f32.mrf.mxu0 }
 0xc49   :  { %v3122_v43 = vadd.f32 %v3121_v14, %v3031_v37 }
 0xc4e   :  { %v3201_v16 = vpop.f32.mrf.mxu0 }
 0xc4f   :  { %v3436_v42 = vpop.f32.mrf.mxu1  ;;  %v3202_v48 = vadd.f32 %v3201_v16, %v3122_v43 }
 0xc50   :  { %v6690_v46 = vpop.f32.mrf.mxu0 }
 0xc51   :  { %v6723_v47 = vpop.f32.mrf.mxu1  ;;  %v3279_v50 = vadd.f32 %v3278_v24, %v3202_v48 }
 0xc57   :  { %v3361_v52 = vpop.f32.mrf.mxu0 }
 0xc58   :  { %v3362_v53 = vadd.f32 %v3361_v52, %v3279_v50 }
 0xc59   :  { %v6712_v54 = vpop.f32.mrf.mxu0 }
 0xc5a   :  { %v3437_v41 = vadd.f32 %v3436_v42, %v3362_v53 }
 0xc5c   :  { %7081 = vtanh.f32 %v3437_v41  ;;  %v5885_v55 = vmul.f32 -1.442695, %v3437_v41 }
 0xc5e   :  { %7083 = vpow2.f32 %v5885_v55 }
 0xc69   :  { %v7082_v44 = vpop.eup %7081 }
 0xc6a   :  { %3449 = vrot.lane.b32.xlu0 %v7082_v44, %s7137_s3 }
 0xc6b   :  { %v7084_v56 = vpop.eup %7083 }
 0xc6c   :  { %v3443_v57 = vadd.f32 1.0, %v7084_v56 }
 0xc6e   :  { %7085 = vrcp.f32 %v3443_v57 }
 0xc7b   :  { %v7086_v40 = vpop.eup %7085 }
 0xc7c   :  { %v3447_v51 = vmul.f32 %v7086_v40, %v7823_v20 }
 0xcdc   :  { %v3450_v59 = vpop.permute.xlu0 %3449 }
 0xcdd   :  { %v3452_v60 = vmul.f32 %v7086_v40, %v3450_v59 }
 0xcdf   :  { %3454 = vrot.lane.b32.xlu1 %v3452_v60, %s7137_s3 }
 0xd51   :  { %v3455_v61 = vpop.permute.xlu1 %3454 }
 0xd52   :  { %v7895_v62 = vadd.f32 %v3455_v61, %v3447_v51 }
 0xd54   :  { %7087 = vtanh.f32 %v7895_v62 }
 0xd61   :  { %v7088_v11 = vpop.eup %7087 }
 0xd62   :  { %3460 = vrot.lane.b32.xlu0 %v7088_v11, %s7137_s3 }
 0xdd4   :  { %v3461_v63 = vpop.permute.xlu0 %3460 }
 0xdd5   :  { %v3463_v1 = vmul.f32 %v7086_v40, %v3461_v63 }
 0xdd7   :  { %3465 = vrot.lane.b32.xlu1 %v3463_v1, %s7138_s28 }
 0xe49   :  { %v3466_v6 = vpop.permute.xlu1 %3465 }
 0xe4a   :  { %3468 = vst.msk [vmem:[#allocation3 + $0x20] sm:$0xff] %vm1383_vm2, %v3466_v6  ;;  %v3472_v12 = vsel %vm43_vm0, %v3466_v6, 0 }
 0xe4b   :  { %3469 = vst.msk [vmem:[#allocation3 + $0x18] sm:$0xff] %vm1386_vm3, %v3466_v6  ;;  %v3543_v20 = vand.u32 4294901760, %v3472_v12 }
 0xe4d   :  { %v3544_v7 = vsub.f32 %v3472_v12, %v3543_v20  ;;  %6744 = vmatmul.mubr.f32.vlgmr.msra.gmra.mxu1 %v3543_v20 }
 0xe4e   :  { %6758 = vmatpush3.msra.mxu1 %v7372_v18  ;;  %6765 = vmatprep.mubr.msk.f32.mxu1 %vm7136_vm1, %v7135_v29 }
 0xe4f   :  { %6759 = vmatprep.subr.mxu1 %v7135_v29  ;;  %v3545_v8 = vand.u32 4294901760, %v3544_v7 }
 0xe50   :  { %6760 = vmatpush3.msra.mxu1 %v7390_v22 }
 0xe51   :  { %6761 = vmatprep.subr.mxu1 %v7135_v29  ;;  %v3546_v17 = vsub.f32 %v3544_v7, %v3545_v8 }
 0xe52   :  { %6762 = vmatpush3.msra.mxu1 %v7414_v31 }
 0xe53   :  { %6763 = vmatprep.subr.mxu1 %v7135_v29  ;;  %v3547_v0 = vand.u32 4294901760, %v3546_v17 }
 0xe54   :  { %6764 = vmatpush3.msra.mxu1 %v7431_v35 }
 0xe55   :  { %6766 = vmatmul.mubr.f32.vlgmr.msra.gmra.mxu1 %v3545_v8  ;;  %6779 = vmatprep.subr.mxu1 %v7135_v29 }
 0xe56   :  { %6733 = vmatmul.mubr.f32.vlgmr.msra.gmra.mxu0 %v3547_v0  ;;  %6780 = vmatpush3.msra.mxu1 %v7372_v18 }
 0xe57   :  { %6747 = vmatpush3.msra.mxu0 %v7388_v23  ;;  %6781 = vmatprep.subr.mxu1 %v7135_v29 }
 0xe58   :  { %6748 = vmatprep.subr.mxu0 %v7135_v29  ;;  %6782 = vmatpush3.msra.mxu1 %v7390_v22 }
 0xe59   :  { %6749 = vmatpush3.msra.mxu0 %v7409_v25  ;;  %6783 = vmatprep.subr.mxu1 %v7135_v29 }
 0xe5a   :  { %6750 = vmatprep.subr.mxu0 %v7135_v29  ;;  %6784 = vmatpush3.msra.mxu1 %v7414_v31 }
 0xe5b   :  { %6751 = vmatpush3.msra.mxu0 %v7437_v36  ;;  %6785 = vmatprep.subr.mxu1 %v7135_v29 }
 0xe5c   :  { %6752 = vmatprep.subr.mxu0 %v7135_v29  ;;  %6754 = vmatprep.mubr.msk.f32.mxu0 %vm7136_vm1, %v7135_v29 }
 0xe5d   :  { %6753 = vmatpush3.msra.mxu0 %v7451_v38  ;;  %6786 = vmatpush3.msra.mxu1 %v7431_v35 }
 0xe5e   :  { %6787 = vmatprep.mubr.msk.f32.mxu1 %vm7136_vm1, %v7135_v29  ;;  %6755 = vmatmul.mubr.f32.vlgmr.msra.gmra.mxu0 %v3544_v7 }
 0xe5f   :  { %6768 = vmatprep.subr.mxu0 %v7135_v29  ;;  %6788 = vmatmul.mubr.f32.vlgmr.msra.gmra.mxu1 %v3543_v20 }
 0xe60   :  { %6769 = vmatpush3.msra.mxu0 %v7406_v3  ;;  %6776 = vmatprep.mubr.msk.f32.mxu0 %vm7136_vm1, %v7135_v29 }
 0xe61   :  { %6770 = vmatprep.subr.mxu0 %v7135_v29  ;;  %6801 = vmatprep.subr.mxu1 %v7135_v29 }
 0xe62   :  { %6771 = vmatpush3.msra.mxu0 %v7429_v26  ;;  %6802 = vmatpush3.msra.mxu1 %v7446_v5 }
 0xe63   :  { %6772 = vmatprep.subr.mxu0 %v7135_v29  ;;  %6803 = vmatprep.subr.mxu1 %v7135_v29 }
 0xe64   :  { %6773 = vmatpush3.msra.mxu0 %v7456_v39  ;;  %6804 = vmatpush3.msra.mxu1 %v7464_v9 }
 0xe65   :  { %6774 = vmatprep.subr.mxu0 %v7135_v29  ;;  %6805 = vmatprep.subr.mxu1 %v7135_v29 }
 0xe66   :  { %6775 = vmatpush3.msra.mxu0 %v7467_v15  ;;  %6806 = vmatpush3.msra.mxu1 %v7483_v27 }
 0xe67   :  { %6777 = vmatmul.mubr.f32.vlgmr.msra.gmra.mxu0 %v3543_v20  ;;  %6807 = vmatprep.subr.mxu1 %v7135_v29 }
 0xe68   :  { %6808 = vmatpush3.msra.mxu1 %v7492_v28  ;;  %6790 = vmatprep.subr.mxu0 %v7135_v29 }
 0xe69   :  { %6809 = vmatprep.mubr.msk.f32.mxu1 %vm7136_vm1, %v7135_v29  ;;  %6823 = vmatprep.subr.mxu1 %v7135_v29 }
 0xe6a   :  { %6791 = vmatpush3.msra.mxu0 %v7372_v18  ;;  %6798 = vmatprep.mubr.msk.f32.mxu0 %vm7136_vm1, %v7135_v29 }
 0xe6b   :  { %6792 = vmatprep.subr.mxu0 %v7135_v29 }
 0xe6c   :  { %6793 = vmatpush3.msra.mxu0 %v7390_v22 }
 0xe6d   :  { %6794 = vmatprep.subr.mxu0 %v7135_v29 }
 0xe6e   :  { %6795 = vmatpush3.msra.mxu0 %v7414_v31 }
 0xe6f   :  { %6796 = vmatprep.subr.mxu0 %v7135_v29 }
 0xe70   :  { %6797 = vmatpush3.msra.mxu0 %v7431_v35 }
 0xe71   :  { %6812 = vmatprep.subr.mxu0 %v7135_v29 }
 0xf0d   :  { %v3640_v2 = vpop.f32.mrf.mxu1 }
 0xf0f   :  { %v6745_v58 = vpop.f32.mrf.mxu1 }
 0xf15   :  { %v3797_v10 = vpop.f32.mrf.mxu1 }
 0xf16   :  { %v3549_v13 = vpop.f32.mrf.mxu0 }
 0xf17   :  { %v6767_v19 = vpop.f32.mrf.mxu1  ;;  %v3550_v14 = vadd.f32 %v3549_v13, %v7593_v21 }
 0xf18   :  { %v6734_v30 = vpop.f32.mrf.mxu0 }
 0xf19   :  { %v3641_v32 = vadd.f32 %v3640_v2, %v3550_v14 }
 0xf1e   :  { %v3720_v34 = vpop.f32.mrf.mxu0 }
 0xf1f   :  { %v3955_v24 = vpop.f32.mrf.mxu1  ;;  %v3721_v37 = vadd.f32 %v3720_v34, %v3641_v32 }
 0xf20   :  { %v6756_v33 = vpop.f32.mrf.mxu0 }
 0xf21   :  { %v6789_v4 = vpop.f32.mrf.mxu1  ;;  %v3798_v16 = vadd.f32 %v3797_v10, %v3721_v37 }
 0xf27   :  { %v3880_v42 = vpop.f32.mrf.mxu0 }
 0xf28   :  { %v3881_v43 = vadd.f32 %v3880_v42, %v3798_v16 }
 0xf29   :  { %v6778_v46 = vpop.f32.mrf.mxu0 }
 0xf2a   :  { %v3956_v47 = vadd.f32 %v3955_v24, %v3881_v43 }
 0xf2c   :  { %7089 = vtanh.f32 %v3956_v47  ;;  %v5886_v50 = vmul.f32 -1.442695, %v3956_v47 }
 0xf2e   :  { %7091 = vpow2.f32 %v5886_v50 }
 0xf39   :  { %v7090_v48 = vpop.eup %7089 }
 0xf3a   :  { %3968 = vrot.lane.b32.xlu0 %v7090_v48, %s7137_s3 }
 0xf3b   :  { %v7092_v52 = vpop.eup %7091 }
 0xf3c   :  { %v3962_v53 = vadd.f32 1.0, %v7092_v52 }
 0xf3e   :  { %7093 = vrcp.f32 %v3962_v53 }
 0xf4b   :  { %v7094_v21 = vpop.eup %7093 }
 0xf4c   :  { %v3966_v44 = vmul.f32 %v7094_v21, %v7895_v62 }
 0xfac   :  { %v3969_v54 = vpop.permute.xlu0 %3968 }
 0xfad   :  { %v3971_v41 = vmul.f32 %v7094_v21, %v3969_v54 }
 0xfaf   :  { %3973 = vrot.lane.b32.xlu1 %v3971_v41, %s7137_s3 }
0x1021   :  { %v3974_v55 = vpop.permute.xlu1 %3973 }
0x1022   :  { %v7967_v56 = vadd.f32 %v3974_v55, %v3966_v44 }
0x1024   :  { %7095 = vtanh.f32 %v7967_v56 }
0x1031   :  { %v7096_v57 = vpop.eup %7095 }
0x1032   :  { %3979 = vrot.lane.b32.xlu0 %v7096_v57, %s7137_s3 }
0x10a4   :  { %v3980_v40 = vpop.permute.xlu0 %3979 }
0x10a5   :  { %v3982_v59 = vmul.f32 %v7094_v21, %v3980_v40 }
0x10a7   :  { %3984 = vrot.lane.b32.xlu1 %v3982_v59, %s7138_s28 }
0x1119   :  { %v3985_v60 = vpop.permute.xlu1 %3984 }
0x111a   :  { %3987 = vst.msk [vmem:[#allocation3 + $0x28] sm:$0xff] %vm1383_vm2, %v3985_v60  ;;  %v3991_v51 = vsel %vm43_vm0, %v3985_v60, 0 }
0x111b   :  { %3988 = vst.msk [vmem:[#allocation3 + $0x10] sm:$0xff] %vm1386_vm3, %v3985_v60  ;;  %v4062_v61 = vand.u32 4294901760, %v3991_v51 }
0x111d   :  { %v4063_v62 = vsub.f32 %v3991_v51, %v4062_v61  ;;  %6810 = vmatmul.mubr.f32.vlgmr.msra.gmra.mxu1 %v4062_v61 }
0x111e   :  { %6824 = vmatpush3.msra.mxu1 %v7372_v18  ;;  %6831 = vmatprep.mubr.msk.f32.mxu1 %vm7136_vm1, %v7135_v29 }
0x111f   :  { %6825 = vmatprep.subr.mxu1 %v7135_v29  ;;  %v4064_v11 = vand.u32 4294901760, %v4063_v62 }
0x1120   :  { %6826 = vmatpush3.msra.mxu1 %v7390_v22 }
0x1121   :  { %6827 = vmatprep.subr.mxu1 %v7135_v29  ;;  %v4065_v63 = vsub.f32 %v4063_v62, %v4064_v11 }
0x1122   :  { %6828 = vmatpush3.msra.mxu1 %v7414_v31 }
0x1123   :  { %6829 = vmatprep.subr.mxu1 %v7135_v29  ;;  %v4066_v1 = vand.u32 4294901760, %v4065_v63 }
0x1124   :  { %6830 = vmatpush3.msra.mxu1 %v7431_v35 }
0x1125   :  { %6832 = vmatmul.mubr.f32.vlgmr.msra.gmra.mxu1 %v4064_v11  ;;  %6845 = vmatprep.subr.mxu1 %v7135_v29 }
0x1126   :  { %6799 = vmatmul.mubr.f32.vlgmr.msra.gmra.mxu0 %v4066_v1  ;;  %6846 = vmatpush3.msra.mxu1 %v7372_v18 }
0x1127   :  { %6813 = vmatpush3.msra.mxu0 %v7388_v23  ;;  %6847 = vmatprep.subr.mxu1 %v7135_v29 }
0x1128   :  { %6814 = vmatprep.subr.mxu0 %v7135_v29  ;;  %6848 = vmatpush3.msra.mxu1 %v7390_v22 }
0x1129   :  { %6815 = vmatpush3.msra.mxu0 %v7409_v25  ;;  %6849 = vmatprep.subr.mxu1 %v7135_v29 }
0x112a   :  { %6816 = vmatprep.subr.mxu0 %v7135_v29  ;;  %6850 = vmatpush3.msra.mxu1 %v7414_v31 }
0x112b   :  { %6817 = vmatpush3.msra.mxu0 %v7437_v36  ;;  %6851 = vmatprep.subr.mxu1 %v7135_v29 }
0x112c   :  { %6818 = vmatprep.subr.mxu0 %v7135_v29  ;;  %6820 = vmatprep.mubr.msk.f32.mxu0 %vm7136_vm1, %v7135_v29 }
0x112d   :  { %6819 = vmatpush3.msra.mxu0 %v7451_v38  ;;  %6852 = vmatpush3.msra.mxu1 %v7431_v35 }
0x112e   :  { %6853 = vmatprep.mubr.msk.f32.mxu1 %vm7136_vm1, %v7135_v29  ;;  %6821 = vmatmul.mubr.f32.vlgmr.msra.gmra.mxu0 %v4063_v62 }
0x112f   :  { %6834 = vmatprep.subr.mxu0 %v7135_v29  ;;  %6854 = vmatmul.mubr.f32.vlgmr.msra.gmra.mxu1 %v4062_v61 }
0x1130   :  { %6835 = vmatpush3.msra.mxu0 %v7406_v3  ;;  %6842 = vmatprep.mubr.msk.f32.mxu0 %vm7136_vm1, %v7135_v29 }
0x1131   :  { %6836 = vmatprep.subr.mxu0 %v7135_v29  ;;  %6867 = vmatprep.subr.mxu1 %v7135_v29 }
0x1132   :  { %6837 = vmatpush3.msra.mxu0 %v7429_v26  ;;  %6868 = vmatpush3.msra.mxu1 %v7446_v5 }
0x1133   :  { %6838 = vmatprep.subr.mxu0 %v7135_v29  ;;  %6869 = vmatprep.subr.mxu1 %v7135_v29 }
0x1134   :  { %6839 = vmatpush3.msra.mxu0 %v7456_v39  ;;  %6870 = vmatpush3.msra.mxu1 %v7464_v9 }
0x1135   :  { %6840 = vmatprep.subr.mxu0 %v7135_v29  ;;  %6871 = vmatprep.subr.mxu1 %v7135_v29 }
0x1136   :  { %6841 = vmatpush3.msra.mxu0 %v7467_v15  ;;  %6872 = vmatpush3.msra.mxu1 %v7483_v27 }
0x1137   :  { %6843 = vmatmul.mubr.f32.vlgmr.msra.gmra.mxu0 %v4062_v61  ;;  %6873 = vmatprep.subr.mxu1 %v7135_v29 }
0x1138   :  { %6874 = vmatpush3.msra.mxu1 %v7492_v28  ;;  %6856 = vmatprep.subr.mxu0 %v7135_v29 }
0x1139   :  { %6875 = vmatprep.mubr.msk.f32.mxu1 %vm7136_vm1, %v7135_v29  ;;  %6889 = vmatprep.subr.mxu1 %v7135_v29 }
0x113a   :  { %6857 = vmatpush3.msra.mxu0 %v7372_v18  ;;  %6864 = vmatprep.mubr.msk.f32.mxu0 %vm7136_vm1, %v7135_v29 }
0x113b   :  { %6858 = vmatprep.subr.mxu0 %v7135_v29 }
0x113c   :  { %6859 = vmatpush3.msra.mxu0 %v7390_v22 }
0x113d   :  { %6860 = vmatprep.subr.mxu0 %v7135_v29 }
0x113e   :  { %6861 = vmatpush3.msra.mxu0 %v7414_v31 }
0x113f   :  { %6862 = vmatprep.subr.mxu0 %v7135_v29 }
0x1140   :  { %6863 = vmatpush3.msra.mxu0 %v7431_v35 }
0x1141   :  { %6878 = vmatprep.subr.mxu0 %v7135_v29 }
0x11dd   :  { %v4159_v5 = vpop.f32.mrf.mxu1 }
0x11df   :  { %v6811_v9 = vpop.f32.mrf.mxu1 }
0x11e5   :  { %v4316_v27 = vpop.f32.mrf.mxu1 }
0x11e6   :  { %v4068_v28 = vpop.f32.mrf.mxu0 }
0x11e7   :  { %v6833_v6 = vpop.f32.mrf.mxu1  ;;  %v4069_v20 = vadd.f32 %v4068_v28, %v7603_v49  ;;  %v5038_v28 = vld [vmem:[%s8297_s4 + $0x18] sm:$0xff] }
0x11e8   :  { %v6800_v12 = vpop.f32.mrf.mxu0  ;;  %v8093_v6 = vand.u32 4294901760, %v5038_v28 }
0x11e9   :  { %v4160_v17 = vadd.f32 %v4159_v5, %v4069_v20  ;;  %v5037_v12 = vld [vmem:[%s8297_s4 + $0x10] sm:$0xff] }
0x11ea   :  { %v8099_v20 = vsub.f32 %v5038_v28, %v8093_v6 }
0x11ee   :  { %v4239_v7 = vpop.f32.mrf.mxu0 }
0x11ef   :  { %v4474_v8 = vpop.f32.mrf.mxu1  ;;  %v4240_v58 = vadd.f32 %v4239_v7, %v4160_v17  ;;  %v8101_v7 = vand.u32 4294901760, %v5037_v12  ;;  %v8109_v17 = vand.u32 4294901760, %v8099_v20 }
0x11f0   :  { %v6822_v0 = vpop.f32.mrf.mxu0 }
0x11f1   :  { %v6855_v2 = vpop.f32.mrf.mxu1  ;;  %v4317_v10 = vadd.f32 %v4316_v27, %v4240_v58  ;;  %v8112_v0 = vsub.f32 %v5037_v12, %v8101_v7  ;;  %v5035_v58 = vld [vmem:[%s8297_s4] sm:$0xff] }
0x11f7   :  { %v4399_v13 = vpop.f32.mrf.mxu0 }
0x11f8   :  { %v4400_v19 = vadd.f32 %v4399_v13, %v4317_v10  ;;  %v5247_v10 = vsub.f32 %v8099_v20, %v8109_v17  ;;  %v8124_v13 = vand.u32 4294901760, %v8112_v0 }
0x11f9   :  { %v6844_v30 = vpop.f32.mrf.mxu0 }
0x11fa   :  { %v4475_v14 = vadd.f32 %v4474_v8, %v4400_v19  ;;  %v5036_v8 = vld [vmem:[%s8297_s4 + $0x8] sm:$0xff]  ;;  %v8129_v30 = vand.u32 4294901760, %v5035_v58 }
0x11fb   :  { %v8114_v2 = vand.u32 4294901760, %v5036_v8 }
0x11fc   :  { %7097 = vtanh.f32 %v4475_v14  ;;  %v5887_v24 = vmul.f32 -1.442695, %v4475_v14  ;;  %v5248_v14 = vand.u32 4294901760, %v5247_v10 }
0x11fd   :  { %v8127_v19 = vsub.f32 %v5036_v8, %v8114_v2 }
0x11fe   :  { %7099 = vpow2.f32 %v5887_v24 }
0x11ff   :  { %v8136_v24 = vand.u32 4294901760, %v8127_v19 }
0x1209   :  { %v7098_v34 = vpop.eup %7097 }
0x120a   :  { %4487 = vrot.lane.b32.xlu0 %v7098_v34, %s7137_s3  ;;  %v5254_v34 = vsub.f32 %v8112_v0, %v8124_v13 }
0x120b   :  { %v7100_v32 = vpop.eup %7099 }
0x120c   :  { %v4481_v33 = vadd.f32 1.0, %v7100_v32  ;;  %v8139_v32 = vsub.f32 %v5035_v58, %v8129_v30 }
0x120e   :  { %7101 = vrcp.f32 %v4481_v33  ;;  %v5255_v33 = vand.u32 4294901760, %v5254_v34 }
0x121b   :  { %v7102_v49 = vpop.eup %7101 }
0x121c   :  { %v4485_v16 = vmul.f32 %v7102_v49, %v7967_v56 }
0x127c   :  { %v4488_v4 = vpop.permute.xlu0 %4487 }
0x127d   :  { %v4490_v37 = vmul.f32 %v7102_v49, %v4488_v4  ;;  %v8146_v4 = vand.u32 4294901760, %v8139_v32 }
0x127f   :  { %4492 = vrot.lane.b32.xlu1 %v4490_v37, %s7137_s3 }
0x12f1   :  { %v4493_v42 = vpop.permute.xlu1 %4492 }
0x12f2   :  { %v8039_v43 = vadd.f32 %v4493_v42, %v4485_v16  ;;  %v5268_v16 = vsub.f32 %v8139_v32, %v8146_v4 }
0x12f4   :  { %7103 = vtanh.f32 %v8039_v43  ;;  %v5269_v42 = vand.u32 4294901760, %v5268_v16 }
0x1301   :  { %v7104_v46 = vpop.eup %7103 }
0x1302   :  { %4498 = vrot.lane.b32.xlu0 %v7104_v46, %s7137_s3 }
0x1374   :  { %v4499_v47 = vpop.permute.xlu0 %4498 }
0x1375   :  { %v4501_v48 = vmul.f32 %v7102_v49, %v4499_v47  ;;  %v5261_v49 = vsub.f32 %v8127_v19, %v8136_v24 }
0x1377   :  { %4503 = vrot.lane.b32.xlu1 %v4501_v48, %s7138_s28  ;;  %v5262_v37 = vand.u32 4294901760, %v5261_v49  ;;  %v5029_v48 = vld [vmem:[#allocation3 + $0x10] sm:$0xff] }
0x13e9   :  { %v4504_v50 = vpop.permute.xlu1 %4503 }
0x13ea   :  { %4506 = vst.msk [vmem:[#allocation3 + $0x30] sm:$0xff] %vm1383_vm2, %v4504_v50  ;;  %v4510_v52 = vsel %vm43_vm0, %v4504_v50, 0 }
0x13eb   :  { %4507 = vst.msk [vmem:[#allocation3 + $0x8] sm:$0xff] %vm1386_vm3, %v4504_v50  ;;  %v4581_v53 = vand.u32 4294901760, %v4510_v52 }
0x13ed   :  { %v4582_v21 = vsub.f32 %v4510_v52, %v4581_v53  ;;  %6876 = vmatmul.mubr.f32.vlgmr.msra.gmra.mxu1 %v4581_v53 }
0x13ee   :  { %6890 = vmatpush3.msra.mxu1 %v7372_v18  ;;  %6897 = vmatprep.mubr.msk.f32.mxu1 %vm7136_vm1, %v7135_v29 }
0x13ef   :  { %6891 = vmatprep.subr.mxu1 %v7135_v29  ;;  %v4583_v54 = vand.u32 4294901760, %v4582_v21 }
0x13f0   :  { %6892 = vmatpush3.msra.mxu1 %v7390_v22 }
0x13f1   :  { %6893 = vmatprep.subr.mxu1 %v7135_v29  ;;  %v4584_v41 = vsub.f32 %v4582_v21, %v4583_v54 }
0x13f2   :  { %6894 = vmatpush3.msra.mxu1 %v7414_v31  ;;  %v5028_v47 = vld [vmem:[#allocation3 + $0x8] sm:$0xff] }
0x13f3   :  { %6895 = vmatprep.subr.mxu1 %v7135_v29  ;;  %v4585_v44 = vand.u32 4294901760, %v4584_v41  ;;  %v5050_v52 = vsel %vm43_vm0, %v5028_v47, 0 }
0x13f4   :  { %6896 = vmatpush3.msra.mxu1 %v7431_v35  ;;  %v8157_v41 = vand.u32 4294901760, %v5050_v52 }
0x13f5   :  { %6898 = vmatmul.mubr.f32.vlgmr.msra.gmra.mxu1 %v4583_v54  ;;  %6911 = vmatprep.subr.mxu1 %v7135_v29  ;;  %v5031_v54 = vld [vmem:[#allocation3 + $0x20] sm:$0xff] }
0x13f6   :  { %6865 = vmatmul.mubr.f32.vlgmr.msra.gmra.mxu0 %v4585_v44  ;;  %6912 = vmatpush3.msra.mxu1 %v7372_v18 }
0x13f7   :  { %6879 = vmatpush3.msra.mxu0 %v7388_v23  ;;  %6913 = vmatprep.subr.mxu1 %v7135_v29 }
0x13f8   :  { %6880 = vmatprep.subr.mxu0 %v7135_v29  ;;  %6914 = vmatpush3.msra.mxu1 %v7390_v22 }
0x13f9   :  { %6881 = vmatpush3.msra.mxu0 %v7409_v25  ;;  %6915 = vmatprep.subr.mxu1 %v7135_v29 }
0x13fa   :  { %6882 = vmatprep.subr.mxu0 %v7135_v29  ;;  %6916 = vmatpush3.msra.mxu1 %v7414_v31 }
0x13fb   :  { %6883 = vmatpush3.msra.mxu0 %v7437_v36  ;;  %6917 = vmatprep.subr.mxu1 %v7135_v29 }
0x13fc   :  { %6884 = vmatprep.subr.mxu0 %v7135_v29  ;;  %6886 = vmatprep.mubr.msk.f32.mxu0 %vm7136_vm1, %v7135_v29 }
0x13fd   :  { %6885 = vmatpush3.msra.mxu0 %v7451_v38  ;;  %6918 = vmatpush3.msra.mxu1 %v7431_v35 }
0x13fe   :  { %6919 = vmatprep.mubr.msk.f32.mxu1 %vm7136_vm1, %v7135_v29  ;;  %6887 = vmatmul.mubr.f32.vlgmr.msra.gmra.mxu0 %v4582_v21  ;;  %v5030_v21 = vld [vmem:[#allocation3 + $0x18] sm:$0xff] }
0x13ff   :  { %6900 = vmatprep.subr.mxu0 %v7135_v29  ;;  %6920 = vmatmul.mubr.f32.vlgmr.msra.gmra.mxu1 %v4581_v53 }
0x1400   :  { %6901 = vmatpush3.msra.mxu0 %v7406_v3  ;;  %6908 = vmatprep.mubr.msk.f32.mxu0 %vm7136_vm1, %v7135_v29 }
0x1401   :  { %6902 = vmatprep.subr.mxu0 %v7135_v29  ;;  %6942 = vmatprep.subr.mxu1 %v5248_v14 }
0x1402   :  { %6903 = vmatpush3.msra.mxu0 %v7429_v26  ;;  %6943 = vmatpush3.msra.mxu1 %v5248_v14 }
0x1403   :  { %6904 = vmatprep.subr.mxu0 %v7135_v29  ;;  %6944 = vmatprep.subr.mxu1 %v5255_v33 }
0x1404   :  { %6905 = vmatpush3.msra.mxu0 %v7456_v39  ;;  %6945 = vmatpush3.msra.mxu1 %v5255_v33 }
0x1405   :  { %6906 = vmatprep.subr.mxu0 %v7135_v29  ;;  %6946 = vmatprep.subr.mxu1 %v5262_v37 }
0x1406   :  { %6907 = vmatpush3.msra.mxu0 %v7467_v15  ;;  %6947 = vmatpush3.msra.mxu1 %v5262_v37 }
0x1407   :  { %6909 = vmatmul.mubr.f32.vlgmr.msra.gmra.mxu0 %v4581_v53  ;;  %6922 = vmatprep.subr.mxu0 %v8093_v6  ;;  %v5053_v53 = vsel %vm43_vm0, %v5029_v48, 0 }
0x1408   :  { %6923 = vmatpush3.msra.mxu0 %v8093_v6  ;;  %6948 = vmatprep.subr.mxu1 %v5269_v42  ;;  %v8159_v44 = vand.u32 4294901760, %v5053_v53 }
0x1409   :  { %6924 = vmatprep.subr.mxu0 %v8101_v7  ;;  %6949 = vmatpush3.msra.mxu1 %v5269_v42 }
0x140a   :  { %6925 = vmatpush3.msra.mxu0 %v8101_v7  ;;  %6982 = vmatprep.subr.mxu1 %v8093_v6 }
0x140b   :  { %6926 = vmatprep.subr.mxu0 %v8114_v2 }
0x140c   :  { %6927 = vmatpush3.msra.mxu0 %v8114_v2 }
0x140d   :  { %6928 = vmatprep.subr.mxu0 %v8129_v30 }
0x140e   :  { %6929 = vmatpush3.msra.mxu0 %v8129_v30 }
0x140f   :  { %6962 = vmatprep.subr.mxu0 %v8099_v20 }
0x14ad   :  { %v4678_v18 = vpop.f32.mrf.mxu1 }
0x14af   :  { %v6877_v23 = vpop.f32.mrf.mxu1 }
0x14b0   :  { %v5059_v23 = vsel %vm43_vm0, %v5031_v54, 0 }
0x14b5   :  { %v4835_v22 = vpop.f32.mrf.mxu1 }
0x14b6   :  { %v4587_v3 = vpop.f32.mrf.mxu0 }
0x14b7   :  { %v6899_v25 = vpop.f32.mrf.mxu1  ;;  %v4588_v35 = vadd.f32 %v4587_v3, %v7600_v45  ;;  %v5033_v3 = vld [vmem:[#allocation3 + $0x30] sm:$0xff] }
0x14b8   :  { %v6866_v31 = vpop.f32.mrf.mxu0  ;;  %v8164_v25 = vsub.f32 %v5050_v52, %v8157_v41 }
0x14b9   :  { %v4679_v26 = vadd.f32 %v4678_v18, %v4588_v35  ;;  %v5056_v18 = vsel %vm43_vm0, %v5030_v21, 0  ;;  %v8168_v35 = vand.u32 4294901760, %v5059_v23 }
0x14ba   :  { %v8166_v31 = vand.u32 4294901760, %v5056_v18 }
0x14be   :  { %v4758_v36 = vpop.f32.mrf.mxu0 }
0x14bf   :  { %v4993_v38 = vpop.f32.mrf.mxu1  ;;  %v4759_v57 = vadd.f32 %v4758_v36, %v4679_v26  ;;  %v8172_v26 = vsub.f32 %v5053_v53, %v8159_v44 }
0x14c0   :  { %v6888_v55 = vpop.f32.mrf.mxu0 }
0x14c1   :  { %v6921_v56 = vpop.f32.mrf.mxu1  ;;  %v4836_v39 = vadd.f32 %v4835_v22, %v4759_v57  ;;  %v5032_v22 = vld [vmem:[#allocation3 + $0x28] sm:$0xff] }
0x14c2   :  { %v5065_v56 = vsel %vm43_vm0, %v5033_v3, 0 }
0x14c7   :  { %v4918_v40 = vpop.f32.mrf.mxu0 }
0x14c8   :  { %v4919_v29 = vadd.f32 %v4918_v40, %v4836_v39  ;;  %v5151_v40 = vand.u32 4294901760, %v8164_v25 }
0x14c9   :  { %v6910_v59 = vpop.f32.mrf.mxu0 }
0x14ca   :  { %v4994_v15 = vadd.f32 %v4993_v38, %v4919_v29  ;;  %v5062_v38 = vsel %vm43_vm0, %v5032_v22, 0  ;;  %v8182_v59 = vsub.f32 %v5056_v18, %v8166_v31 }
0x14cb   :  { %v8179_v29 = vand.u32 4294901760, %v5062_v38 }
0x14cc   :  { %7105 = vtanh.f32 %v4994_v15  ;;  %v5888_v51 = vmul.f32 -1.442695, %v4994_v15  ;;  %v8185_v15 = vsub.f32 %v5059_v23, %v8168_v35 }
0x14ce   :  { %7107 = vpow2.f32 %v5888_v51  ;;  %v5161_v51 = vand.u32 4294901760, %v8172_v26  ;;  %v5181_v28 = vand.u32 4294901760, %v8185_v15 }
0x14d0   :  { %v5182_v49 = vsub.f32 %v8185_v15, %v5181_v28 }
0x14d9   :  { %v7106_v60 = vpop.eup %7105 }
0x14da   :  { %5006 = vrot.lane.b32.xlu0 %v7106_v60, %s7137_s3 }
0x14db   :  { %v7108_v61 = vpop.eup %7107 }
0x14dc   :  { %v5000_v62 = vadd.f32 1.0, %v7108_v61  ;;  %v8192_v61 = vand.u32 4294901760, %v5065_v56 }
0x14de   :  { %7109 = vrcp.f32 %v5000_v62  ;;  %v8212_v12 = vsub.f32 %v5065_v56, %v8192_v61 }
0x14e0   :  { %v5201_v37 = vand.u32 4294901760, %v8212_v12 }
0x14e2   :  { %v5202_v47 = vsub.f32 %v8212_v12, %v5201_v37 }
0x14eb   :  { %v7110_v45 = vpop.eup %7109 }
0x14ec   :  { %v5004_v1 = vmul.f32 %v7110_v45, %v8039_v43 }
0x154c   :  { %v5007_v11 = vpop.permute.xlu0 %5006 }
0x154d   :  { %v5009_v63 = vmul.f32 %v7110_v45, %v5007_v11  ;;  %v5152_v11 = vsub.f32 %v8164_v25, %v5151_v40 }
0x154f   :  { %5011 = vrot.lane.b32.xlu1 %v5009_v63, %s7137_s3  ;;  %v5171_v63 = vand.u32 4294901760, %v8182_v59  ;;  %v5153_v58 = vand.u32 4294901760, %v5152_v11 }
0x1551   :  { %v5172_v10 = vsub.f32 %v8182_v59, %v5171_v63 }
0x1553   :  { %v5173_v16 = vand.u32 4294901760, %v5172_v10 }
0x15c1   :  { %v5012_v5 = vpop.permute.xlu1 %5011 }
0x15c2   :  { %v5014_v9 = vadd.f32 %v5012_v5, %v5004_v1  ;;  %v8205_v5 = vsub.f32 %v5062_v38, %v8179_v29 }
0x15c4   :  { %7111 = vtanh.f32 %v5014_v9  ;;  %v5191_v14 = vand.u32 4294901760, %v8205_v5 }
0x15c6   :  { %v5192_v42 = vsub.f32 %v8205_v5, %v5191_v14 }
0x15d1   :  { %v7112_v27 = vpop.eup %7111 }
0x15d2   :  { %5017 = vrot.lane.b32.xlu0 %v7112_v27, %s7137_s3  ;;  %v5162_v27 = vsub.f32 %v8172_v26, %v5161_v51 }
0x15d4   :  { %v5163_v33 = vand.u32 4294901760, %v5162_v27 }
0x1644   :  { %v5018_v43 = vpop.permute.xlu0 %5017 }
0x1645   :  { %v5020_v46 = vmul.f32 %v7110_v45, %v5018_v43 }
0x1647   :  { %5022 = vrot.lane.b32.xlu1 %v5020_v46, %s7138_s28  ;;  %v5183_v46 = vand.u32 4294901760, %v5182_v49 }
0x16b9   :  { %v5023_v50 = vpop.permute.xlu1 %5022 }
0x16ba   :  { %5025 = vst.msk [vmem:[#allocation3 + $0x38] sm:$0xff] %vm1383_vm2, %v5023_v50 }
0x16bb   :  { %5026 = vst.msk [vmem:[#allocation3] sm:$0xff] %vm1386_vm3, %v5023_v50  ;;  %v5203_v50 = vand.u32 4294901760, %v5202_v47 }
0x16c1   :  { %v5034_v57 = vld [vmem:[#allocation3 + $0x38] sm:$0xff] }
0x16c2   :  { %v5027_v36 = vld [vmem:[#allocation3] sm:$0xff]  ;;  %v5068_v62 = vsel %vm43_vm0, %v5034_v57, 0 }
0x16c3   :  { %v5047_v55 = vsel %vm43_vm0, %v5027_v36, 0  ;;  %v8202_v1 = vand.u32 4294901760, %v5068_v62 }
0x16c4   :  { %v8176_v39 = vand.u32 4294901760, %v5047_v55 }
0x16c5   :  { %v8222_v34 = vsub.f32 %v5068_v62, %v8202_v1 }
0x16c6   :  { %6950 = vmatprep.mubr.f32.mxu1 %v8176_v39  ;;  %v8189_v60 = vsub.f32 %v5047_v55, %v8176_v39 }
0x16c7   :  { %6951 = vmatmul.mubr.f32.vlgmr.msra.gmra.mxu1 %v8157_v41  ;;  %v5211_v43 = vand.u32 4294901760, %v8222_v34 }
0x16c8   :  { %6953 = vmatprep.mubr.f32.mxu1 %v8159_v44  ;;  %v5141_v45 = vand.u32 4294901760, %v8189_v60  ;;  %6983 = vmatpush3.msra.mxu1 %v8093_v6 }
0x16c9   :  { %6984 = vmatprep.subr.mxu1 %v8101_v7  ;;  %v5212_v48 = vsub.f32 %v8222_v34, %v5211_v43 }
0x16ca   :  { %v5142_v9 = vsub.f32 %v8189_v60, %v5141_v45  ;;  %6985 = vmatpush3.msra.mxu1 %v8101_v7 }
0x16cb   :  { %6954 = vmatmul.mubr.f32.gmra.mxu1 %v8166_v31  ;;  %6986 = vmatprep.subr.mxu1 %v8114_v2  ;;  %v5213_v52 = vand.u32 4294901760, %v5212_v48 }
0x16cc   :  { %6956 = vmatprep.mubr.f32.mxu1 %v8168_v35  ;;  %v5143_v8 = vand.u32 4294901760, %v5142_v9  ;;  %6987 = vmatpush3.msra.mxu1 %v8114_v2 }
0x16cd   :  { %6988 = vmatprep.subr.mxu1 %v8129_v30 }
0x16ce   :  { %6930 = vmatprep.mubr.f32.mxu0 %v5143_v8  ;;  %6989 = vmatpush3.msra.mxu1 %v8129_v30 }
0x16cf   :  { %6931 = vmatmul.mubr.f32.vlgmr.msra.gmra.mxu0 %v5153_v58  ;;  %6957 = vmatmul.mubr.f32.gmra.mxu1 %v8179_v29 }
0x16d0   :  { %6933 = vmatprep.mubr.f32.mxu0 %v5163_v33  ;;  %6959 = vmatprep.mubr.f32.mxu1 %v8192_v61 }
0x16d1   :  { %6963 = vmatpush3.msra.mxu0 %v8099_v20  ;;  %7022 = vmatprep.subr.mxu1 %v8093_v6  ;;  %v5193_v20 = vand.u32 4294901760, %v5192_v42 }
0x16d2   :  { %6964 = vmatprep.subr.mxu0 %v8112_v0 }
0x16d3   :  { %6934 = vmatmul.mubr.f32.gmra.mxu0 %v5173_v16  ;;  %6960 = vmatmul.mubr.f32.gmra.mxu1 %v8202_v1 }
0x16d4   :  { %6936 = vmatprep.mubr.f32.mxu0 %v5183_v46  ;;  %6965 = vmatpush3.msra.mxu0 %v8112_v0 }
0x16d5   :  { %6990 = vmatprep.mubr.f32.mxu1 %v5141_v45  ;;  %6966 = vmatprep.subr.mxu0 %v8127_v19 }
0x16d6   :  { %6967 = vmatpush3.msra.mxu0 %v8127_v19 }
0x16d7   :  { %6937 = vmatmul.mubr.f32.gmra.mxu0 %v5193_v20  ;;  %6991 = vmatmul.mubr.f32.vlgmr.msra.gmra.mxu1 %v5151_v40 }
0x16d8   :  { %6939 = vmatprep.mubr.f32.mxu0 %v5203_v50  ;;  %6993 = vmatprep.mubr.f32.mxu1 %v5161_v51 }
0x16d9   :  { %6968 = vmatprep.subr.mxu0 %v8139_v32  ;;  %7023 = vmatpush3.msra.mxu1 %v8093_v6 }
0x16da   :  { %6969 = vmatpush3.msra.mxu0 %v8139_v32  ;;  %7024 = vmatprep.subr.mxu1 %v8101_v7 }
0x16db   :  { %6940 = vmatmul.mubr.f32.gmra.mxu0 %v5213_v52  ;;  %6994 = vmatmul.mubr.f32.gmra.mxu1 %v5171_v63 }
0x16dc   :  { %6970 = vmatprep.mubr.f32.mxu0 %v8189_v60  ;;  %6996 = vmatprep.mubr.f32.mxu1 %v5181_v28 }
0x16dd   :  { %7002 = vmatprep.subr.mxu0 %v8109_v17  ;;  %7025 = vmatpush3.msra.mxu1 %v8101_v7 }
0x16de   :  { %7026 = vmatprep.subr.mxu1 %v8114_v2 }
0x16df   :  { %6971 = vmatmul.mubr.f32.vlgmr.msra.gmra.mxu0 %v8164_v25  ;;  %6997 = vmatmul.mubr.f32.gmra.mxu1 %v5191_v14 }
0x16e0   :  { %6973 = vmatprep.mubr.f32.mxu0 %v8172_v26  ;;  %6999 = vmatprep.mubr.f32.mxu1 %v5201_v37 }
0x16e1   :  { %7003 = vmatpush3.msra.mxu0 %v8109_v17  ;;  %7027 = vmatpush3.msra.mxu1 %v8114_v2 }
0x16e2   :  { %7004 = vmatprep.subr.mxu0 %v8124_v13  ;;  %7028 = vmatprep.subr.mxu1 %v8129_v30 }
0x16e3   :  { %6974 = vmatmul.mubr.f32.gmra.mxu0 %v8182_v59  ;;  %7000 = vmatmul.mubr.f32.gmra.mxu1 %v5211_v43 }
0x16e4   :  { %6976 = vmatprep.mubr.f32.mxu0 %v8185_v15  ;;  %7005 = vmatpush3.msra.mxu0 %v8124_v13 }
0x16e5   :  { %7030 = vmatprep.mubr.f32.mxu1 %v8176_v39  ;;  %7029 = vmatpush3.msra.mxu1 %v8129_v30 }
0x16e6   :  { %7006 = vmatprep.subr.mxu0 %v8136_v24 }
0x16e7   :  { %6977 = vmatmul.mubr.f32.gmra.mxu0 %v8205_v5  ;;  %7031 = vmatmul.mubr.f32.vlgmr.msra.gmra.mxu1 %v8157_v41 }
0x16e8   :  { %6979 = vmatprep.mubr.f32.mxu0 %v8212_v12  ;;  %7007 = vmatpush3.msra.mxu0 %v8136_v24 }
0x16e9   :  { %7033 = vmatprep.mubr.f32.mxu1 %v8159_v44  ;;  %7008 = vmatprep.subr.mxu0 %v8146_v4 }
0x16ea   :  { %7009 = vmatpush3.msra.mxu0 %v8146_v4 }
0x16eb   :  { %6980 = vmatmul.mubr.f32.gmra.mxu0 %v8222_v34  ;;  %7034 = vmatmul.mubr.f32.gmra.mxu1 %v8166_v31 }
0x16ec   :  { %7010 = vmatprep.mubr.f32.mxu0 %v8176_v39  ;;  %7036 = vmatprep.mubr.f32.mxu1 %v8168_v35 }
0x16ef   :  { %7011 = vmatmul.mubr.f32.vlgmr.msra.gmra.mxu0 %v8157_v41  ;;  %7037 = vmatmul.mubr.f32.gmra.mxu1 %v8179_v29 }
0x16f0   :  { %7013 = vmatprep.mubr.f32.mxu0 %v8159_v44  ;;  %7039 = vmatprep.mubr.f32.mxu1 %v8192_v61 }
0x16f3   :  { %7014 = vmatmul.mubr.f32.gmra.mxu0 %v8166_v31  ;;  %7040 = vmatmul.mubr.f32.gmra.mxu1 %v8202_v1 }
0x16f4   :  { %7016 = vmatprep.mubr.f32.mxu0 %v8168_v35  ;;  %v5889_v35 = vld [vmem:[%s8298_s5] ss:$0 sm:$0xff]  ;;  %s7139_s5 = smov [#allocation4]  }
0x16f5   :  { %s5869_s13 = sshll.u32 %s7139_s5, 4  ;;  %s5870_s13 = int_to_ptr.vmem [resolvable:$true] %s5869_s13 }
0x16f6   :  { %s7113_s14 = scalar_lea.vmem %s5870_s13, 1024  ;;  %p7118_p1 = scmp.lt.s32.totalorder %s5870_s13, %s5870_s13 }
0x16f7   :  { %7017 = vmatmul.mubr.f32.gmra.mxu0 %v8179_v29  ;;  %p7114_p0 = scmp.ne.s32.totalorder %s5870_s13, %s7113_s14  ;;  %p7119_p2 = scmp.lt.s32.totalorder %s7113_s14, %s7113_s14 }
0x16f8   :  { %7019 = vmatprep.mubr.f32.mxu0 %v8192_v61 }
0x16f9   :  { %p7120_p3 = por %p7119_p2, %p7118_p1 }
0x16fb   :  { %7020 = vmatmul.mubr.f32.gmra.mxu0 %v8202_v1  ;;  %p7121_p4 = pnand %p7120_p3, %p7114_p0 }
0x1787   :  { %v6952_v6 = vpop.f32.mrf.mxu1 }
0x1789   :  { %v5306_v7 = vpop.f32.mrf.mxu1 }
0x178b   :  { %v6955_v17 = vpop.f32.mrf.mxu1 }
0x178d   :  { %v5318_v0 = vpop.f32.mrf.mxu1 }
0x178f   :  { %v6932_v2 = vpop.f32.mrf.mxu0  ;;  %v6958_v13 = vpop.f32.mrf.mxu1 }
0x1790   :  { %v5156_v56 = vadd.f32 %v6932_v2, %v5889_v35 }
0x1791   :  { %v5145_v19 = vpop.f32.mrf.mxu0  ;;  %v5330_v30 = vpop.f32.mrf.mxu1 }
0x1792   :  { %v5146_v40 = vadd.f32 %v5889_v35, %v5145_v19  ;;  %v5313_v60 = vadd.f32 %v6952_v6, %v5156_v56 }
0x1793   :  { %v6935_v24 = vpop.f32.mrf.mxu0  ;;  %v6961_v32 = vpop.f32.mrf.mxu1 }
0x1794   :  { %v5176_v15 = vadd.f32 %v6935_v24, %v5889_v35  ;;  %v5307_v11 = vadd.f32 %v5306_v7, %v5146_v40 }
0x1795   :  { %v5165_v4 = vpop.f32.mrf.mxu0  ;;  %v5342_v53 = vpop.f32.mrf.mxu1 }
0x1796   :  { %v5166_v62 = vadd.f32 %v5889_v35, %v5165_v4  ;;  %v5325_v27 = vadd.f32 %v6955_v17, %v5176_v15 }
0x1797   :  { %v6938_v21 = vpop.f32.mrf.mxu0  ;;  %v6992_v54 = vpop.f32.mrf.mxu1 }
0x1798   :  { %v5196_v5 = vadd.f32 %v6938_v21, %v5889_v35  ;;  %v5319_v58 = vadd.f32 %v5318_v0, %v5166_v62 }
0x1799   :  { %v5185_v41 = vpop.f32.mrf.mxu0  ;;  %v5554_v44 = vpop.f32.mrf.mxu1 }
0x179a   :  { %v5186_v28 = vadd.f32 %v5889_v35, %v5185_v41  ;;  %v5337_v37 = vadd.f32 %v6958_v13, %v5196_v5 }
0x179b   :  { %v6941_v18 = vpop.f32.mrf.mxu0  ;;  %v6995_v23 = vpop.f32.mrf.mxu1 }
0x179c   :  { %v5216_v14 = vadd.f32 %v6941_v18, %v5889_v35  ;;  %v5331_v46 = vadd.f32 %v5330_v30, %v5186_v28 }
0x179d   :  { %v5205_v22 = vpop.f32.mrf.mxu0  ;;  %v5570_v3 = vpop.f32.mrf.mxu1 }
0x179e   :  { %v5206_v43 = vadd.f32 %v5889_v35, %v5205_v22  ;;  %v5349_v6 = vadd.f32 %v6961_v32, %v5216_v14 }
0x179f   :  { %v6972_v25 = vpop.f32.mrf.mxu0  ;;  %v6998_v31 = vpop.f32.mrf.mxu1 }
0x17a0   :  { %v5436_v45 = vadd.f32 %v6972_v25, %v5313_v60  ;;  %v5343_v4 = vadd.f32 %v5342_v53, %v5206_v43 }
0x17a1   :  { %v5428_v36 = vpop.f32.mrf.mxu0  ;;  %v5586_v38 = vpop.f32.mrf.mxu1 }
0x17a2   :  { %v5429_v9 = vadd.f32 %v5428_v36, %v5307_v11  ;;  %v5563_v10 = vadd.f32 %v6992_v54, %v5436_v45 }
0x17a3   :  { %v6975_v26 = vpop.f32.mrf.mxu0  ;;  %v8284_v55 = vpop.f32.mrf.mxu1 }
0x17a4   :  { %v5450_v8 = vadd.f32 %v6975_v26, %v5325_v27  ;;  %v5555_v42 = vadd.f32 %v5554_v44, %v5429_v9 }
0x17a5   :  { %v5442_v57 = vpop.f32.mrf.mxu0  ;;  %v8286_v39 = vpop.f32.mrf.mxu1 }
0x17a6   :  { %v5443_v49 = vadd.f32 %v5442_v57, %v5319_v58  ;;  %v5579_v52 = vadd.f32 %v6995_v23, %v5450_v8 }
0x17a7   :  { %v6978_v29 = vpop.f32.mrf.mxu0  ;;  %v7032_v59 = vpop.f32.mrf.mxu1 }
0x17a8   :  { %v5464_v20 = vadd.f32 %v6978_v29, %v5337_v37  ;;  %v5571_v24 = vadd.f32 %v5570_v3, %v5443_v49 }
0x17a9   :  { %v5456_v51 = vpop.f32.mrf.mxu0  ;;  %v5810_v61 = vpop.f32.mrf.mxu1 }
0x17aa   :  { %v5457_v2 = vadd.f32 %v5456_v51, %v5331_v46  ;;  %v5595_v30 = vadd.f32 %v6998_v31, %v5464_v20 }
0x17ab   :  { %v6981_v63 = vpop.f32.mrf.mxu0  ;;  %v7035_v1 = vpop.f32.mrf.mxu1 }
0x17ac   :  { %v5478_v13 = vadd.f32 %v6981_v63, %v5349_v6  ;;  %v5587_v25 = vadd.f32 %v5586_v38, %v5457_v2 }
0x17ad   :  { %v5470_v12 = vpop.f32.mrf.mxu0  ;;  %v5822_v34 = vpop.f32.mrf.mxu1 }
0x17ae   :  { %v5471_v22 = vadd.f32 %v5470_v12, %v5343_v4  ;;  %v5611_v3 = vadd.f32 %v8284_v55, %v5478_v13 }
0x17af   :  { %v7012_v33 = vpop.f32.mrf.mxu0  ;;  %v7038_v7 = vpop.f32.mrf.mxu1 }
0x17b0   :  { %v5700_v16 = vadd.f32 %v7012_v33, %v5563_v10  ;;  %v5603_v31 = vadd.f32 %v8286_v39, %v5471_v22 }
0x17b1   :  { %v5693_v47 = vpop.f32.mrf.mxu0  ;;  %v5834_v44 = vpop.f32.mrf.mxu1 }
0x17b2   :  { %v5817_v48 = vadd.f32 %v7032_v59, %v5700_v16  ;;  %v5694_v50 = vadd.f32 %v5693_v47, %v5555_v42 }
0x17b3   :  { %v7015_v17 = vpop.f32.mrf.mxu0  ;;  %v7041_v53 = vpop.f32.mrf.mxu1 }
0x17b4   :  { %5857 = vst [vmem:[#allocation4 + $0x8] sm:$0xff] %v5817_v48  ;;  %v5811_v0 = vadd.f32 %v5810_v61, %v5694_v50  ;;  %v5712_v19 = vadd.f32 %v7015_v17, %v5579_v52 }
0x17b5   :  { %v5705_v21 = vpop.f32.mrf.mxu0  ;;  %v5846_v38 = vpop.f32.mrf.mxu1 }
0x17b6   :  { %5856 = vst [vmem:[#allocation4] sm:$0xff] %v5811_v0  ;;  %v5829_v54 = vadd.f32 %v7035_v1, %v5712_v19  ;;  %v5706_v41 = vadd.f32 %v5705_v21, %v5571_v24 }
0x17b7   :  { %v7018_v18 = vpop.f32.mrf.mxu0 }
0x17b8   :  { %5859 = vst [vmem:[#allocation4 + $0x18] sm:$0xff] %v5829_v54  ;;  %v5823_v23 = vadd.f32 %v5822_v34, %v5706_v41  ;;  %v5724_v32 = vadd.f32 %v7018_v18, %v5595_v30 }
0x17b9   :  { %v5717_v35 = vpop.f32.mrf.mxu0 }
0x17ba   :  { %5858 = vst [vmem:[#allocation4 + $0x10] sm:$0xff] %v5823_v23  ;;  %v5841_v36 = vadd.f32 %v7038_v7, %v5724_v32  ;;  %v5718_v26 = vadd.f32 %v5717_v35, %v5587_v25 }
0x17bb   :  { %v7021_v56 = vpop.f32.mrf.mxu0 }
0x17bc   :  { %5861 = vst [vmem:[#allocation4 + $0x28] sm:$0xff] %v5841_v36  ;;  %v5835_v57 = vadd.f32 %v5834_v44, %v5718_v26  ;;  %v5736_v40 = vadd.f32 %v7021_v56, %v5611_v3 }
0x17bd   :  { %v5729_v29 = vpop.f32.mrf.mxu0 }
0x17be   :  { %5860 = vst [vmem:[#allocation4 + $0x20] sm:$0xff] %v5835_v57  ;;  %v5853_v59 = vadd.f32 %v7041_v53, %v5736_v40  ;;  %v5730_v15 = vadd.f32 %v5729_v29, %v5603_v31 }
0x17c0   :  { %5863 = vst [vmem:[#allocation4 + $0x38] sm:$0xff] %v5853_v59  ;;  %v5847_v60 = vadd.f32 %v5846_v38, %v5730_v15 }
0x17c2   :  { %5862 = vst [vmem:[#allocation4 + $0x30] sm:$0xff] %v5847_v60 }
0x17c3   :  { %7124 = shalt.err (!%p7121_p4)
}
0x17c4   :  { %s7140_s15 = smov 128   ;;  %s7141_s16 = smov 8  }
0x17c5   :  { %5875 = dma.vmem_to_hbm [thread:$0]  %s5870_s13, 1024, %s8299_s6, [#allocation5], %s7140_s15, %s7140_s15, %s7141_s16  }
0x17c6   :  { %7133 = dma.done.wait [#allocation5], 1024  }
0x17c7   :  { %7134 = vsyncadd [#allocation5], 4294966272 }
0x17c8   :  { %5879 = vsyncpa [#allocation5], 1 }

</bundles_post_ra>
